<compile_context>
chip_gen: v6e
topology: v6e:2x2x1
jax: 0.10.0
libtpu: 0.0.40
codegen_flags: <defaults>
</compile_context>

<pallas_src>
import functools
import math

import jax
import jax.numpy as jnp
from jax import lax
from jax.experimental import pallas as pl
from jax.experimental.pallas import tpu as pltpu

_MIB = 1024 * 1024


def _round_up(x, m):
    return ((x + m - 1) // m) * m


def _vmem_capacity_bytes():
    try:
        return int(pltpu.get_tpu_info().vmem_capacity_bytes)
    except Exception:
        return 64 * _MIB  # conservative fallback: v7x has the smallest VMEM


# ---------------------------------------------------------------------------
# Kernels
# ---------------------------------------------------------------------------

def _skipmlp_resident_kernel(root_ref, left_ref, w_r_ref, w_l_ref, b_in_ref,
                             w_h_ref, b_h_ref, out_ref, *, nlayers):
    """grid = (batch_tiles,).  Whole hidden-weight stack is VMEM-resident and
    the layer chain is an unrolled in-kernel loop (no per-layer grid steps)."""
    roots = root_ref[...]                                    # f32, kept for skip
    h = (jnp.dot(roots.astype(w_r_ref.dtype), w_r_ref[...],
                 preferred_element_type=jnp.float32)
         + jnp.dot(left_ref[...], w_l_ref[...],
                   preferred_element_type=jnp.float32)
         + b_in_ref[...])

    def layer(i, h):
        a = jnp.maximum(h, 0.0).astype(w_h_ref.dtype)
        return (jnp.dot(a, w_h_ref[i], preferred_element_type=jnp.float32)
                + b_h_ref[i])

    h = lax.fori_loop(0, nlayers, layer, h, unroll=True)
    out_ref[...] = roots + h


def _skipmlp_stream_kernel(root_ref, left_ref, w_r_ref, w_l_ref, b_in_ref,
                           w_h_ref, b_h_ref, out_ref, acc_ref):
    """grid = (batch_tiles, nlayers); hidden weights streamed one layer/step."""
    l = pl.program_id(1)

    # Input layer on the first layer step: h = root@W_r + left@W_l + b_in
    @pl.when(l == 0)
    def _():
        acc_ref[...] = (
            jnp.dot(root_ref[...].astype(w_r_ref.dtype), w_r_ref[...],
                    preferred_element_type=jnp.float32)
            + jnp.dot(left_ref[...], w_l_ref[...],
                      preferred_element_type=jnp.float32)
            + b_in_ref[...])

    # Hidden layer l: h = relu(h) @ W_h[l] + b_h[l]
    a = jnp.maximum(acc_ref[...], 0.0).astype(w_h_ref.dtype)
    acc_ref[...] = (jnp.dot(a, w_h_ref[...], preferred_element_type=jnp.float32)
                    + b_h_ref[...])

    # Skip connection on the last layer step.
    @pl.when(l == pl.num_programs(1) - 1)
    def _():
        out_ref[...] = root_ref[...] + acc_ref[...]


# ---------------------------------------------------------------------------
# VMEM footprint estimates (double-buffering budgeted conservatively)
# ---------------------------------------------------------------------------

def _resident_vmem_bytes(block_m, d, nlayers, w_bytes, act_bytes):
    db = 2                                      # BlockSpec double-buffering
    b = db * block_m * d * 4                    # roots tile (f32)
    b += db * block_m * d * act_bytes           # lefts tile
    b += db * 2 * d * d * w_bytes               # W_r + W_l
    b += db * d * 4                             # b_in
    b += db * nlayers * d * d * w_bytes         # full hidden-weight stack
    b += db * nlayers * d * 4                   # hidden biases
    b += db * block_m * d * 4                   # out tile (f32)
    b += 2 * block_m * d * 4                    # live f32 activations
    return b


def _stream_vmem_bytes(block_m, d, w_bytes, act_bytes):
    db = 2
    b = db * block_m * d * 4                    # roots tile
    b += db * block_m * d * act_bytes           # lefts tile
    b += db * 2 * d * d * w_bytes               # W_r + W_l (resident)
    b += db * d * 4                             # b_in
    b += db * d * d * w_bytes                   # one streamed W_h slice
    b += db * d * 4                             # one streamed b_h slice
    b += db * block_m * d * 4                   # out tile
    b += block_m * d * 4                        # f32 accumulator scratch
    return b


# ---------------------------------------------------------------------------
# Wrappers
# ---------------------------------------------------------------------------

def skipmlp_unary_agg_forward_batched(roots, lefts, params, *, block_m=512,
                                      force_stream=None):
    """roots, lefts: [M, d_model] f32 (M independent nodes) -> [M, d_model] f32."""
    w_r, w_l, b_in, w_h, b_h = params
    num_nodes, d_model = roots.shape
    nlayers = int(w_h.shape[0])
    assert nlayers >= 1, "nlayers must be >= 1 (as in the PyTorch module)"
    assert lefts.shape == (num_nodes, d_model)

    # lefts only feed the matmul -> cast to the weight dtype host-side to halve
    # activation-input DMA; roots stay f32 (needed for the f32 residual).
    lefts = lefts.astype(w_l.dtype)

    # Batch-tile size: multiple of 8 sublanes; pad the batch to a multiple of it.
    block_m = int(max(8, min(block_m, _round_up(num_nodes, 8))))
    block_m = _round_up(block_m, 8)
    padded = _round_up(num_nodes, block_m)
    if padded != num_nodes:
        pad = padded - num_nodes
        roots = jnp.pad(roots, ((0, pad), (0, 0)))
        lefts = jnp.pad(lefts, ((0, pad), (0, 0)))
    batch_tiles = padded // block_m

    w_bytes = jnp.dtype(w_h.dtype).itemsize
    act_bytes = jnp.dtype(lefts.dtype).itemsize
    capacity = _vmem_capacity_bytes()
    budget = int(capacity * 0.8)     # headroom for compiler internal scratch

    res_est = _resident_vmem_bytes(block_m, d_model, nlayers, w_bytes, act_bytes)
    use_stream = (res_est > budget) if force_stream is None else bool(force_stream)

    if not use_stream:
        # Resident path: single grid axis, layer chain fused in-kernel.
        est = res_est
        grid = (batch_tiles,)
        in_specs = [
            pl.BlockSpec((block_m, d_model), lambda b: (b, 0)),          # roots
            pl.BlockSpec((block_m, d_model), lambda b: (b, 0)),          # lefts
            pl.BlockSpec((d_model, d_model), lambda b: (0, 0)),          # W_r
            pl.BlockSpec((d_model, d_model), lambda b: (0, 0)),          # W_l
            pl.BlockSpec((1, d_model), lambda b: (0, 0)),                # b_in
            pl.BlockSpec((nlayers, d_model, d_model), lambda b: (0, 0, 0)),
            pl.BlockSpec((nlayers, 1, d_model), lambda b: (0, 0, 0)),
        ]
        out_specs = pl.BlockSpec((block_m, d_model), lambda b: (b, 0))
        scratch_shapes = []
        kernel = functools.partial(_skipmlp_resident_kernel, nlayers=nlayers)
        dim_sems = ("parallel",)
    else:
        # Streaming path: weight stack too large for VMEM -> one layer per step.
        # TODO(synk): single-buffer the constant blocks (roots/W_r/W_l/b_in) via
        # pipeline_mode=pl.Buffered(1) once verified on the target jax version.
        est = _stream_vmem_bytes(block_m, d_model, w_bytes, act_bytes)
        grid = (batch_tiles, nlayers)
        in_specs = [
            pl.BlockSpec((block_m, d_model), lambda b, l: (b, 0)),       # roots
            pl.BlockSpec((block_m, d_model), lambda b, l: (b, 0)),       # lefts
            pl.BlockSpec((d_model, d_model), lambda b, l: (0, 0)),       # W_r
            pl.BlockSpec((d_model, d_model), lambda b, l: (0, 0)),       # W_l
            pl.BlockSpec((1, d_model), lambda b, l: (0, 0)),             # b_in
            pl.BlockSpec((pl.Squeezed(), d_model, d_model),
                         lambda b, l: (l, 0, 0)),                        # W_h[l]
            pl.BlockSpec((pl.Squeezed(), 1, d_model),
                         lambda b, l: (l, 0, 0)),                        # b_h[l]
        ]
        out_specs = pl.BlockSpec((block_m, d_model), lambda b, l: (b, 0))
        scratch_shapes = [pltpu.VMEM((block_m, d_model), jnp.float32)]
        kernel = _skipmlp_stream_kernel
        dim_sems = ("parallel", "arbitrary")

    vmem_limit = int(min(budget, max(int(est * 1.5), 32 * _MIB)))

    out = pl.pallas_call(
        kernel,
        out_shape=jax.ShapeDtypeStruct((padded, d_model), jnp.float32),
        grid_spec=pltpu.PrefetchScalarGridSpec(
            num_scalar_prefetch=0,
            grid=grid,
            in_specs=in_specs,
            out_specs=out_specs,
            scratch_shapes=scratch_shapes,
        ),
        compiler_params=pltpu.CompilerParams(
            dimension_semantics=dim_sems,
            vmem_limit_bytes=vmem_limit),
    )(roots, lefts, w_r, w_l, b_in, w_h, b_h)

    return out[:num_nodes]


def skipmlp_unary_agg_forward(root, left, params):
    """Single-node API matching the PyTorch forward(root, left).

    Latency-bound (M=8 after padding): keep only as a correctness fallback and
    batch whole tree levels through the batched API whenever possible."""
    d_model = root.shape[0]
    out = skipmlp_unary_agg_forward_batched(root.reshape(1, d_model),
                                            left.reshape(1, d_model),
                                            params, block_m=8)
    return out[0]


# ---------------------------------------------------------------------------
# Params / reference
# ---------------------------------------------------------------------------

def init_params(key, d_model, nlayers, weight_dtype=jnp.bfloat16):
    """PyTorch-Linear-style init.  The (d, 2d) input weight is split into its
    root and left halves and pre-transposed for `x @ W.T`; matmul weights are
    cast to `weight_dtype` (bf16 default — a deliberate numerical deviation
    from f32 torch.nn.Linear), biases stay f32."""
    ks = jax.random.split(key, 4)
    bound_in = 1.0 / math.sqrt(2.0 * d_model)
    w_in = jax.random.uniform(ks[0], (d_model, 2 * d_model), jnp.float32,
                              -bound_in, bound_in)
    b_in = jax.random.uniform(ks[1], (d_model,), jnp.float32,
                              -bound_in, bound_in)
    bound_h = 1.0 / math.sqrt(float(d_model))
    w_h = jax.random.uniform(ks[2], (nlayers, d_model, d_model), jnp.float32,
                             -bound_h, bound_h)
    b_h = jax.random.uniform(ks[3], (nlayers, d_model), jnp.float32,
                             -bound_h, bound_h)

    w_r = w_in[:, :d_model].T.astype(weight_dtype)   # (d, d): root @ w_r
    w_l = w_in[:, d_model:].T.astype(weight_dtype)   # (d, d): left @ w_l
    w_h_t = jnp.transpose(w_h, (0, 2, 1)).astype(weight_dtype)  # (nlayers, d, d)
    return (w_r, w_l, b_in.reshape(1, d_model), w_h_t,
            b_h.reshape(nlayers, 1, d_model))


def reference_forward_batched(roots, lefts, params):
    """Pure-JAX reference with identical bf16/f32 casting behaviour."""
    w_r, w_l, b_in, w_h, b_h = params
    h = (jnp.dot(roots.astype(w_r.dtype), w_r, preferred_element_type=jnp.float32)
         + jnp.dot(lefts.astype(w_l.dtype), w_l, preferred_element_type=jnp.float32)
         + b_in)
    for i in range(w_h.shape[0]):
        a = jnp.maximum(h, 0.0).astype(w_h.dtype)
        h = jnp.dot(a, w_h[i], preferred_element_type=jnp.float32) + b_h[i]
    return roots + h


if __name__ == "__main__":
    d_model = 128      # lane-dense feature dim (multiple of 128)
    nlayers = 3
    num_nodes = 512    # batch of independent (root, left) node pairs per call

    key = jax.random.PRNGKey(0)
    k_r, k_l, k_p = jax.random.split(key, 3)
    roots = jax.random.normal(k_r, (num_nodes, d_model), jnp.float32)
    lefts = jax.random.normal(k_l, (num_nodes, d_model), jnp.float32)
    params = init_params(k_p, d_model, nlayers)

    ref = reference_forward_batched(roots, lefts, params)

    # Primary path: hidden-weight stack VMEM-resident, layer loop fused in-kernel.
    out = skipmlp_unary_agg_forward_batched(roots, lefts, params, block_m=256)
    out = jax.block_until_ready(out)
    assert out.shape == (num_nodes, d_model)
    assert jnp.allclose(out, ref, atol=1e-2, rtol=1e-2), \
        float(jnp.max(jnp.abs(out - ref)))

    # Fallback path: per-layer weight streaming (auto-selected when the stack
    # exceeds the per-generation VMEM budget); exercised here for correctness.
    out_s = skipmlp_unary_agg_forward_batched(roots, lefts, params,
                                              block_m=256, force_stream=True)
    out_s = jax.block_until_ready(out_s)
    assert jnp.allclose(out_s, ref, atol=1e-2, rtol=1e-2), \
        float(jnp.max(jnp.abs(out_s - ref)))

    # Single-node API (mirrors the PyTorch module's forward(root, left)).
    out1 = skipmlp_unary_agg_forward(roots[0], lefts[0], params)
    out1 = jax.block_until_ready(out1)
    assert out1.shape == (d_model,)
    assert jnp.allclose(out1, ref[0], atol=1e-2, rtol=1e-2)

    print("KERNEL_OK")
</pallas_src>

<mosaic_0001>
module attributes {stable_mosaic.version = 11 : i64} {
  func.func @_skipmlp_resident_kernel(%arg0: i32, %arg1: memref<256x128xf32, #tpu.memory_space<vmem>>, %arg2: memref<256x128xbf16, #tpu.memory_space<vmem>>, %arg3: memref<128x128xbf16, #tpu.memory_space<vmem>>, %arg4: memref<128x128xbf16, #tpu.memory_space<vmem>>, %arg5: memref<1x128xf32, #tpu.memory_space<vmem>>, %arg6: memref<3x128x128xbf16, #tpu.memory_space<vmem>>, %arg7: memref<3x1x128xf32, #tpu.memory_space<vmem>>, %arg8: memref<256x128xf32, #tpu.memory_space<vmem>>) attributes {dimension_semantics = [#tpu.dimension_semantics<parallel>], iteration_bounds = array<i64: 2>, scalar_prefetch = 0 : i64, scratch_operands = 0 : i64, tpu.core_type = #tpu.core_type<tc>, window_params = [{transform_indices = @transform_0, window_bounds = array<i64: 256, 128>}, {transform_indices = @transform_1, window_bounds = array<i64: 256, 128>}, {pipeline_mode = #tpu.pipeline_mode<synchronous>, transform_indices = @transform_2, window_bounds = array<i64: 128, 128>}, {pipeline_mode = #tpu.pipeline_mode<synchronous>, transform_indices = @transform_3, window_bounds = array<i64: 128, 128>}, {pipeline_mode = #tpu.pipeline_mode<synchronous>, transform_indices = @transform_4, window_bounds = array<i64: 1, 128>}, {pipeline_mode = #tpu.pipeline_mode<synchronous>, transform_indices = @transform_5, window_bounds = array<i64: 3, 128, 128>}, {pipeline_mode = #tpu.pipeline_mode<synchronous>, transform_indices = @transform_6, window_bounds = array<i64: 3, 1, 128>}, {transform_indices = @transform_7, window_bounds = array<i64: 256, 128>}]} {
    %c0 = arith.constant 0 : index
    %c0_0 = arith.constant 0 : index
    %0 = vector.load %arg1[%c0, %c0_0] : memref<256x128xf32, #tpu.memory_space<vmem>>, vector<256x128xf32>
    %1 = arith.truncf %0 : vector<256x128xf32> to vector<256x128xbf16>
    %c0_1 = arith.constant 0 : index
    %c0_2 = arith.constant 0 : index
    %2 = vector.load %arg3[%c0_1, %c0_2] : memref<128x128xbf16, #tpu.memory_space<vmem>>, vector<128x128xbf16>
    %cst = arith.constant dense<0.000000e+00> : vector<256x128xf32>
    %3 = tpu.matmul %1, %2, %cst {dimension_numbers = #tpu.dot_dimension_numbers<[1], [0], [0], [1], [0, 0, 1, 1], [], []>} : vector<256x128xbf16>, vector<128x128xbf16>, vector<256x128xf32> -> vector<256x128xf32>
    %c0_3 = arith.constant 0 : index
    %c0_4 = arith.constant 0 : index
    %4 = vector.load %arg2[%c0_3, %c0_4] : memref<256x128xbf16, #tpu.memory_space<vmem>>, vector<256x128xbf16>
    %c0_5 = arith.constant 0 : index
    %c0_6 = arith.constant 0 : index
    %5 = vector.load %arg4[%c0_5, %c0_6] : memref<128x128xbf16, #tpu.memory_space<vmem>>, vector<128x128xbf16>
    %cst_7 = arith.constant dense<0.000000e+00> : vector<256x128xf32>
    %6 = tpu.matmul %4, %5, %cst_7 {dimension_numbers = #tpu.dot_dimension_numbers<[1], [0], [0], [1], [0, 0, 1, 1], [], []>} : vector<256x128xbf16>, vector<128x128xbf16>, vector<256x128xf32> -> vector<256x128xf32>
    %7 = arith.addf %3, %6 : vector<256x128xf32>
    %c0_8 = arith.constant 0 : index
    %c0_9 = arith.constant 0 : index
    %8 = vector.load %arg5[%c0_8, %c0_9] : memref<1x128xf32, #tpu.memory_space<vmem>>, vector<1x128xf32>
    %9 = vector.broadcast %8 : vector<1x128xf32> to vector<256x128xf32>
    %10 = arith.addf %7, %9 : vector<256x128xf32>
    %c0_i32 = arith.constant 0 : i32
    %cst_10 = arith.constant 0.000000e+00 : f32
    %11 = vector.broadcast %cst_10 : f32 to vector<256x128xf32>
    %12 = arith.maximumf %10, %11 : vector<256x128xf32>
    %13 = arith.truncf %12 : vector<256x128xf32> to vector<256x128xbf16>
    %14 = arith.index_cast %c0_i32 : i32 to index
    %c0_11 = arith.constant 0 : index
    %c0_12 = arith.constant 0 : index
    %15 = vector.load %arg6[%14, %c0_11, %c0_12] : memref<3x128x128xbf16, #tpu.memory_space<vmem>>, vector<1x128x128xbf16>
    %16 = vector.shape_cast %15 : vector<1x128x128xbf16> to vector<128x128xbf16>
    %cst_13 = arith.constant dense<0.000000e+00> : vector<256x128xf32>
    %17 = tpu.matmul %13, %16, %cst_13 {dimension_numbers = #tpu.dot_dimension_numbers<[1], [0], [0], [1], [0, 0, 1, 1], [], []>} : vector<256x128xbf16>, vector<128x128xbf16>, vector<256x128xf32> -> vector<256x128xf32>
    %18 = arith.index_cast %c0_i32 : i32 to index
    %c0_14 = arith.constant 0 : index
    %c0_15 = arith.constant 0 : index
    %19 = vector.load %arg7[%18, %c0_14, %c0_15] : memref<3x1x128xf32, #tpu.memory_space<vmem>>, vector<1x1x128xf32>
    %20 = vector.shape_cast %19 : vector<1x1x128xf32> to vector<1x128xf32>
    %21 = vector.broadcast %20 : vector<1x128xf32> to vector<256x128xf32>
    %22 = arith.addf %17, %21 : vector<256x128xf32>
    %c1_i32 = arith.constant 1 : i32
    %cst_16 = arith.constant 0.000000e+00 : f32
    %23 = vector.broadcast %cst_16 : f32 to vector<256x128xf32>
    %24 = arith.maximumf %22, %23 : vector<256x128xf32>
    %25 = arith.truncf %24 : vector<256x128xf32> to vector<256x128xbf16>
    %26 = arith.index_cast %c1_i32 : i32 to index
    %c0_17 = arith.constant 0 : index
    %c0_18 = arith.constant 0 : index
    %27 = vector.load %arg6[%26, %c0_17, %c0_18] : memref<3x128x128xbf16, #tpu.memory_space<vmem>>, vector<1x128x128xbf16>
    %28 = vector.shape_cast %27 : vector<1x128x128xbf16> to vector<128x128xbf16>
    %cst_19 = arith.constant dense<0.000000e+00> : vector<256x128xf32>
    %29 = tpu.matmul %25, %28, %cst_19 {dimension_numbers = #tpu.dot_dimension_numbers<[1], [0], [0], [1], [0, 0, 1, 1], [], []>} : vector<256x128xbf16>, vector<128x128xbf16>, vector<256x128xf32> -> vector<256x128xf32>
    %30 = arith.index_cast %c1_i32 : i32 to index
    %c0_20 = arith.constant 0 : index
    %c0_21 = arith.constant 0 : index
    %31 = vector.load %arg7[%30, %c0_20, %c0_21] : memref<3x1x128xf32, #tpu.memory_space<vmem>>, vector<1x1x128xf32>
    %32 = vector.shape_cast %31 : vector<1x1x128xf32> to vector<1x128xf32>
    %33 = vector.broadcast %32 : vector<1x128xf32> to vector<256x128xf32>
    %34 = arith.addf %29, %33 : vector<256x128xf32>
    %c2_i32 = arith.constant 2 : i32
    %cst_22 = arith.constant 0.000000e+00 : f32
    %35 = vector.broadcast %cst_22 : f32 to vector<256x128xf32>
    %36 = arith.maximumf %34, %35 : vector<256x128xf32>
    %37 = arith.truncf %36 : vector<256x128xf32> to vector<256x128xbf16>
    %38 = arith.index_cast %c2_i32 : i32 to index
    %c0_23 = arith.constant 0 : index
    %c0_24 = arith.constant 0 : index
    %39 = vector.load %arg6[%38, %c0_23, %c0_24] : memref<3x128x128xbf16, #tpu.memory_space<vmem>>, vector<1x128x128xbf16>
    %40 = vector.shape_cast %39 : vector<1x128x128xbf16> to vector<128x128xbf16>
    %cst_25 = arith.constant dense<0.000000e+00> : vector<256x128xf32>
    %41 = tpu.matmul %37, %40, %cst_25 {dimension_numbers = #tpu.dot_dimension_numbers<[1], [0], [0], [1], [0, 0, 1, 1], [], []>} : vector<256x128xbf16>, vector<128x128xbf16>, vector<256x128xf32> -> vector<256x128xf32>
    %42 = arith.index_cast %c2_i32 : i32 to index
    %c0_26 = arith.constant 0 : index
    %c0_27 = arith.constant 0 : index
    %43 = vector.load %arg7[%42, %c0_26, %c0_27] : memref<3x1x128xf32, #tpu.memory_space<vmem>>, vector<1x1x128xf32>
    %44 = vector.shape_cast %43 : vector<1x1x128xf32> to vector<1x128xf32>
    %45 = vector.broadcast %44 : vector<1x128xf32> to vector<256x128xf32>
    %46 = arith.addf %41, %45 : vector<256x128xf32>
    %c3_i32 = arith.constant 3 : i32
    %47 = arith.addf %0, %46 : vector<256x128xf32>
    %c0_28 = arith.constant 0 : index
    %c0_29 = arith.constant 0 : index
    %48 = vector.load %arg8[%c0_28, %c0_29] : memref<256x128xf32, #tpu.memory_space<vmem>>, vector<256x128xf32>
    tpu.vector_store %arg8[%c0_28, %c0_29], %47 {strides = array<i32>} : memref<256x128xf32, #tpu.memory_space<vmem>>, vector<256x128xf32>,
    return
  }
  func.func @transform_0(%arg0: i32) -> (i32, i32) {
    %c0_i32 = arith.constant 0 : i32
    %c0_i32_0 = arith.constant 0 : i32
    return %arg0, %c0_i32 : i32, i32
  }
  func.func @transform_1(%arg0: i32) -> (i32, i32) {
    %c0_i32 = arith.constant 0 : i32
    %c0_i32_0 = arith.constant 0 : i32
    return %arg0, %c0_i32 : i32, i32
  }
  func.func @transform_2(%arg0: i32) -> (i32, i32) {
    %c0_i32 = arith.constant 0 : i32
    %c0_i32_0 = arith.constant 0 : i32
    %c0_i32_1 = arith.constant 0 : i32
    return %c0_i32, %c0_i32_0 : i32, i32
  }
  func.func @transform_3(%arg0: i32) -> (i32, i32) {
    %c0_i32 = arith.constant 0 : i32
    %c0_i32_0 = arith.constant 0 : i32
    %c0_i32_1 = arith.constant 0 : i32
    return %c0_i32, %c0_i32_0 : i32, i32
  }
  func.func @transform_4(%arg0: i32) -> (i32, i32) {
    %c0_i32 = arith.constant 0 : i32
    %c0_i32_0 = arith.constant 0 : i32
    %c0_i32_1 = arith.constant 0 : i32
    return %c0_i32, %c0_i32_0 : i32, i32
  }
  func.func @transform_5(%arg0: i32) -> (i32, i32, i32) {
    %c0_i32 = arith.constant 0 : i32
    %c0_i32_0 = arith.constant 0 : i32
    %c0_i32_1 = arith.constant 0 : i32
    %c0_i32_2 = arith.constant 0 : i32
    return %c0_i32, %c0_i32_0, %c0_i32_1 : i32, i32, i32
  }
  func.func @transform_6(%arg0: i32) -> (i32, i32, i32) {
    %c0_i32 = arith.constant 0 : i32
    %c0_i32_0 = arith.constant 0 : i32
    %c0_i32_1 = arith.constant 0 : i32
    %c0_i32_2 = arith.constant 0 : i32
    return %c0_i32, %c0_i32_0, %c0_i32_1 : i32, i32, i32
  }
  func.func @transform_7(%arg0: i32) -> (i32, i32) {
    %c0_i32 = arith.constant 0 : i32
    %c0_i32_0 = arith.constant 0 : i32
    return %arg0, %c0_i32 : i32, i32
  }
}

</mosaic_0001>

<bundles_post_ra>
// kernel: tpu_custom_call.1
= control target key start
LH: loop header
LB: loop body
LE: loop exit
PB: predicated region body
PF: predicated region fallthrough
CT: control target
= control target key end

     0   :  { %s3578_s0 = inlined_call_operand.hbm [shape: f32[512,128], index: 0, kind: input, shape index: {}]   ;;  %s3579_s1 = inlined_call_operand.hbm [shape: bf16[512,128], index: 1, kind: input, shape index: {}]   ;;  %s3580_s2 = inlined_call_operand.hbm [shape: bf16[128,128], index: 2, kind: input, shape index: {}]   ;;  %s3581_s3 = inlined_call_operand.hbm [shape: bf16[128,128], index: 3, kind: input, shape index: {}]   ;;  %s3582_s4 = inlined_call_operand.vmem [shape: f32[1,128], index: 4, kind: input, shape index: {}]   ;;  %s3583_s5 = inlined_call_operand.hbm [shape: bf16[3,128,128], index: 5, kind: input, shape index: {}]   ;;  %s3584_s6 = inlined_call_operand.vmem [shape: f32[3,1,128], index: 6, kind: input, shape index: {}]   ;;  %s3585_s7 = inlined_call_operand.hbm [shape: f32[512,128], index: 7, kind: output, shape index: {}]  }
   0x1   :  { %3591 = sst [smem:[#allocation18_spill]] %s3578_s0 }
   0x2   :  { %3592 = sst [smem:[#allocation19_spill]] %s3580_s2 }
   0x3   :  { %3593 = sst [smem:[#allocation20_spill]] %s3581_s3 }
   0x4   :  { %3594 = sst [smem:[#allocation21_spill]] %s3583_s5 }
   0x5   :  { %12 = vsyncpa [#allocation3], 0 }
   0x6   :  { %14 = vsyncpa [#allocation3 + $0x1], 0 }
   0x7   :  { %15 = vsyncpa [#allocation6], 0 }
   0x8   :  { %17 = vsyncpa [#allocation6 + $0x1], 0 }
   0x9   :  { %18 = vsyncpa [#allocation9], 0 }
   0xa   :  { %19 = vsyncpa [#allocation4], 0 }
   0xb   :  { %21 = vsyncpa [#allocation4 + $0x1], 0  ;;  %s3000_s24 = smov 0   ;;  %s3002_s25 = smov 0  }
   0xc   :  { %s3004_s26 = smov 0   ;;  %s3006_s27 = smov 0  }
   0xd LB: > { %s3021_s28 = sadd.s32 4294967295, %s2946_s27   ;;  %s2095_s29 = sadd.s32 4294967294, %s2946_s27   ;;  %s2946_s27 = sphi %s3006_s27, %s3621_s27   ;;  %s2942_s26 = sphi %s3004_s26, %s3620_s26   ;;  %s2938_s25 = sphi %s3002_s25, %s3619_s25   ;;  %s2934_s24 = sphi %s3000_s24, %s3618_s24  }
   0xe   : > { %p47_p0 = scmp.ne.s32.totalorder %s2938_s25, %s2934_s24  ;;  %p3586_p1 = scmp.eq.s32.totalorder %s3021_s28, 0 }
   0xf   : > { %p202_p2 = scmp.eq.s32.totalorder %s3021_s28, 1  ;;  %p208_p3 = scmp.eq.s32.totalorder %s2095_s29, 1 }
  0x10   : > { %p3030_p4 = por %p3586_p1, %p47_p0  ;;  %p2096_p5 = scmp.ge.s32.totalorder %s2946_s27, 1 }
  0x11   : > { %p3035_p6 = por %p208_p3, %p47_p0  ;;  %p215_p7 = scmp.lt.s32.totalorder %s2946_s27, 3 }
  0x12   : > { %s3595_s30 = scalar_select %p3030_p4, 1, 0 }
  0x13   : > { %s3596_s8 = scalar_select %p3035_p6, 1, 0 }
  0x14   : > { %p3040_p8 = pnand %p2096_p5, %p215_p7  ;;  %s2948_s10 = smov [#allocation7]  }
  0x15   : > { %s227_s11 = sshll.u32 %s2948_s10, 4  ;;  %s2949_s13 = smov [#allocation8]   ;;  %s228_s11 = int_to_ptr.vmem [resolvable:$true] %s227_s11 }
  0x16   : > { %p2578_p9 = pneg %p3040_p8  ;;  %s240_s14 = sshll.u32 %s2949_s13, 4  ;;  %s241_s14 = int_to_ptr.vmem [resolvable:$true] %s240_s14 }
  0x17   : > { %s2950_s15 = smov [#allocation10]   ;;  %s2747_s17 = scalar_lea.vmem %s228_s11, 1024 }
  0x18   : > { %p3049_p11 = pnand %p2578_p9, %p3586_p1  ;;  %s256_s16 = sshll.u32 %s2950_s15, 4  ;;  %s257_s16 = int_to_ptr.vmem [resolvable:$true] %s256_s16 }
  0x19   : > { %p2748_p13 = scmp.ne.s32.totalorder %s228_s11, %s2747_s17  ;;  %p2755_p5 = scmp.lt.s32.totalorder %s228_s11, %s228_s11 }
  0x1a   : > { %p2738_p12 = pneg %p3049_p11  ;;  %p2756_p7 = scmp.lt.s32.totalorder %s2747_s17, %s2747_s17 }
  0x1c   : > { %p2750_p0 = pnand %p2748_p13, %p2738_p12  ;;  %p2757_p9 = por %p2756_p7, %p2755_p5 }
  0x1e   : > { %p2751_p3 = pneg %p2750_p0 }
  0x20   : > { %p2758_p10 = pnand %p2757_p9, %p2751_p3 }
  0x22   : > { %2761 = shalt.err (!%p2758_p10)
}
  0x23   : > { %s3587_s18 = smov 64   ;;  %s3588_s19 = smov 4  }
  0x24   : > { %s3599_s2 = sld [smem:[#allocation19_spill]]  ;;  %s2773_s22 = scalar_lea.vmem %s241_s14, 1024 }
  0x25   : > { %p2774_p13 = scmp.ne.s32.totalorder %s241_s14, %s2773_s22  ;;  %p2781_p3 = scmp.lt.s32.totalorder %s241_s14, %s241_s14 }
  0x26   : > { %p2782_p10 = scmp.lt.s32.totalorder %s2773_s22, %s2773_s22 }
  0x27   : > { %p2776_p0 = pnand %p2774_p13, %p2738_p12 }
  0x28   : > { %p2783_p7 = por %p2782_p10, %p2781_p3 }
  0x29   : > { %p2777_p5 = pneg %p2776_p0 }
  0x2a   : > { %2581 = dma.hbm_to_vmem [thread:$0]  (!%p3049_p11), %s3599_s2, 1024, %s228_s11, [#allocation6], %s3587_s18, %s3587_s18, %s3588_s19  }
  0x2b   : > { %p2784_p9 = pnand %p2783_p7, %p2777_p5 }
  0x2d   : > { %2787 = shalt.err (!%p2784_p9)
}
  0x2e   : > { %s3600_s3 = sld [smem:[#allocation20_spill]]  ;;  %s2799_s10 = scalar_lea.vmem %s257_s16, 3072 }
  0x2f   : > { %p2800_p1 = scmp.ne.s32.totalorder %s257_s16, %s2799_s10  ;;  %p2807_p3 = scmp.lt.s32.totalorder %s257_s16, %s257_s16 }
  0x30   : > { %p2808_p5 = scmp.lt.s32.totalorder %s2799_s10, %s2799_s10 }
  0x31   : > { %p2802_p13 = pnand %p2800_p1, %p2738_p12 }
  0x32   : > { %p2809_p10 = por %p2808_p5, %p2807_p3 }
  0x33   : > { %p2803_p0 = pneg %p2802_p13 }
  0x34   : > { %2584 = dma.hbm_to_vmem [thread:$0]  (!%p3049_p11), %s3600_s3, 1024, %s241_s14, [#allocation9], %s3587_s18, %s3587_s18, %s3588_s19  }
  0x35   : > { %p2810_p7 = pnand %p2809_p10, %p2803_p0 }
  0x37   : > { %2813 = shalt.err (!%p2810_p7)
}
  0x38   : > { %s3601_s5 = sld [smem:[#allocation21_spill]]  ;;  %s3089_s14 = sadd.s32 1, %s2946_s27  }
  0x39   : > { %s31_s12 = ssub.s32 %s2946_s27, %s3089_s14  ;;  %s34_s15 = sadd.s32 1, %s2942_s26 }
  0x3a   : > { %p32_p1 = scmp.eq.s32.totalorder %s31_s12, 0  ;;  %p41_p12 = scmp.ne.s32.totalorder %s2942_s26, %s2938_s25 }
  0x3b   : > { %p42_p9 = scmp.eq.s32.totalorder %s2946_s27, 0  ;;  %p2602_p13 = scmp.lt.s32.totalorder %s2946_s27, 2 }
  0x3c   : > { %s3099_s17 = scalar_select %p32_p1, %s2942_s26, %s34_s15  }
  0x3d   : > { %p43_p0 = por %p42_p9, %p41_p12  ;;  %p3103_p3 = por %p202_p2, %p41_p12 }
  0x3e   : > { %2587 = dma.hbm_to_vmem [thread:$0]  (!%p3049_p11), %s3601_s5, 3072, %s257_s16, [#allocation9], %s3587_s18, %s3587_s18, %s3588_s19  }
  0x3f   : > { %3602 = sst [smem:[#allocation17_spill]] %s3099_s17  ;;  %s3108_s21 = sand.u32 1, %s2942_s26  }
  0x40   : > { %s3603_s20 = scalar_select %p3103_p3, 1, 0 }
  0x41   : > { %s2181_s16 = sshll.u32 %s2946_s27, 12  ;;  %s2101_s22 = sshll.u32 %s3108_s21, 8 }
  0x42   : > { %s3604_s0 = sld [smem:[#allocation18_spill]]  ;;  %s277_s11 = scalar_lea.vmem [#allocation2], %s2101_s22 }
  0x43   : > { %s284_s13 = sshll.u32 %s277_s11, 4  ;;  %p3117_p2 = pnand %p2602_p13, %p43_p0  ;;  %s3121_s13 = int_to_ptr.vmem [resolvable:$true] %s284_s13 }
  0x45   : > { %p2816_p5 = pneg %p3117_p2 }
  0x48   : > { %s3115_s10 = scalar_lea.hbm %s3604_s0, %s2181_s16  ;;  %s2819_s23 = scalar_lea.hbm %s3604_s0, 8192 }
  0x49   : > { %s2814_s18 = scalar_lea.hbm %s3115_s10, 4096  ;;  %p2820_p1 = scmp.lt.s32.totalorder %s3115_s10, %s3604_s0 }
  0x4a   : > { %p2815_p11 = scmp.ne.s32.totalorder %s3115_s10, %s2814_s18  ;;  %p2821_p12 = scmp.lt.s32.totalorder %s2819_s23, %s2814_s18 }
  0x4c   : > { %p2817_p10 = pnand %p2816_p5, %p2815_p11  ;;  %p2822_p9 = por %p2821_p12, %p2820_p1 }
  0x4e   : > { %p2818_p7 = pneg %p2817_p10 }
  0x50   : > { %p2823_p13 = pnand %p2822_p9, %p2818_p7 }
  0x52   : > { %2826 = shalt.err (!%p2823_p13)
}
  0x53   : > { %s2827_s19 = scalar_lea.vmem %s3121_s13, 4096  ;;  %s2953_s16 = smov [#allocation2]  }
  0x54   : > { %p2828_p0 = scmp.ne.s32.totalorder %s3121_s13, %s2827_s19  ;;  %s2832_s22 = sshll.u32 %s2953_s16, 4  ;;  %s2833_s22 = int_to_ptr.vmem [resolvable:$false] %s2832_s22 }
  0x55   : > { %s2834_s15 = scalar_lea.vmem %s2833_s22, 8192  ;;  %p2835_p6 = scmp.lt.s32.totalorder %s3121_s13, %s2833_s22 }
  0x56   : > { %p2830_p11 = pnand %p2828_p0, %p2816_p5  ;;  %p2836_p3 = scmp.lt.s32.totalorder %s2834_s15, %s2827_s19 }
  0x58   : > { %p2831_p10 = pneg %p2830_p11  ;;  %p2837_p4 = por %p2836_p3, %p2835_p6 }
  0x5a   : > { %p2838_p1 = pnand %p2837_p4, %p2831_p10 }
  0x5c   : > { %2841 = shalt.err (!%p2838_p1)
}
  0x5d   : > { %s2954_s18 = smov 128   ;;  %s2955_s23 = smov 8  }
  0x5e   : > { %s3606_s29 = scalar_lea.sflag [#allocation3], %s3108_s21  ;;  %s294_s11 = sand.u32 1, %s2946_s27  }
  0x5f   : > { %2591 = dma.hbm_to_vmem [thread:$0]  (!%p3117_p2), %s3115_s10, 4096, %s3121_s13, %s3606_s29, %s2954_s18, %s2954_s18, %s2955_s23  }
  0x60   : > { %s2104_s16 = sshll.u32 %s3108_s21, 7  ;;  %s2182_s22 = sshll.u32 %s2946_s27, 11 }
  0x61   : > { %s298_s19 = scalar_lea.vmem [#allocation5], %s2104_s16  ;;  %s3156_s3 = scalar_lea.hbm %s3579_s1, %s2182_s22 }
  0x62   : > { %s305_s15 = sshll.u32 %s298_s19, 4  ;;  %s295_s5 = scalar_lea.sflag [#allocation6], %s294_s11  ;;  %s3158_s15 = int_to_ptr.vmem [resolvable:$true] %s305_s15 }
  0x63   : > { %s2842_s17 = scalar_lea.hbm %s3156_s3, 2048  ;;  %s2847_s13 = scalar_lea.hbm %s3579_s1, 4096 }
  0x64   : > { %p2843_p4 = scmp.ne.s32.totalorder %s3156_s3, %s2842_s17  ;;  %p2848_p7 = scmp.lt.s32.totalorder %s3156_s3, %s3579_s1 }
  0x65   : > { %p2849_p12 = scmp.lt.s32.totalorder %s2847_s13, %s2842_s17 }
  0x66   : > { %p2845_p6 = pnand %p2843_p4, %p2816_p5 }
  0x67   : > { %p2850_p9 = por %p2849_p12, %p2848_p7 }
  0x68   : > { %p2846_p3 = pneg %p2845_p6 }
  0x6a   : > { %p2851_p13 = pnand %p2850_p9, %p2846_p3 }
  0x6c   : > { %2854 = shalt.err (!%p2851_p13)
}
  0x6d   : > { %s2855_s2 = scalar_lea.vmem %s3158_s15, 2048  ;;  %s2956_s23 = smov [#allocation5]  }
  0x6e   : > { %p2856_p0 = scmp.ne.s32.totalorder %s3158_s15, %s2855_s2  ;;  %s2860_s29 = sshll.u32 %s2956_s23, 4  ;;  %s2861_s29 = int_to_ptr.vmem [resolvable:$false] %s2860_s29 }
  0x6f   : > { %s2862_s11 = scalar_lea.vmem %s2861_s29, 4096  ;;  %p2863_p1 = scmp.lt.s32.totalorder %s3158_s15, %s2861_s29 }
  0x70   : > { %p2858_p11 = pnand %p2856_p0, %p2816_p5  ;;  %p2864_p4 = scmp.lt.s32.totalorder %s2862_s11, %s2855_s2 }
  0x72   : > { %p2859_p10 = pneg %p2858_p11  ;;  %p2865_p6 = por %p2864_p4, %p2863_p1 }
  0x74   : > { %p2866_p7 = pnand %p2865_p6, %p2859_p10 }
  0x76   : > { %2869 = shalt.err (!%p2866_p7)
}
  0x77   : > { %s3607_s17 = smov 4   ;;  %s3608_s16 = smov 64  }
  0x78   : > { %2594 = dma.hbm_to_vmem [thread:$0]  (!%p3117_p2), %s3156_s3, 2048, %s3158_s15, %s295_s5, %s3608_s16, %s3608_s16, %s3607_s17  }
  0x79   : > { %317 = sbr.rel (%p3040_p8) target bundleno = 1095 (0x447), region = 48  ;;  %s3188_s22 = sand.u32 (!%p3040_p8), 1, %s2938_s25  }
  0x7a   : > { %s2108_s19 = sshll.u32 (!%p3040_p8), %s3188_s22, 8  ;;  %s320_s21 = scalar_lea.sflag (!%p3040_p8), [#allocation3], %s3188_s22 }
  0x7b   : > { %s3194_s12 = scalar_lea.vmem (!%p3040_p8), [#allocation2], %s2108_s19  ;;  %p3609_p5 = scmp.ne.s32.totalorder (!%p3040_p8), %s3595_s30, 0 }
  0x7e   : > { %2913 = dma.done.wait (%p3609_p5), %s320_s21, 4096  }
  0x7f   : > { %2915 = vsyncadd (%p3609_p5), %s320_s21, 4294963200  ;;  %s328_s3 = sand.u32 1, %s3021_s28   ;;  %s2109_s5 = sshll.u32 %s3188_s22, 7 }
  0x80   : > { %s329_s9 = scalar_lea.sflag [#allocation6], %s328_s3  ;;  %s3202_s15 = scalar_lea.vmem [#allocation5], %s2109_s5 }
  0x81   : > { %2917 = dma.done.wait (%p3609_p5), %s329_s9, 2048  }
  0x82   : > { %2919 = vsyncadd (%p3609_p5), %s329_s9, 4294965248  ;;  %p3610_p8 = scmp.eq.s32.totalorder %s3021_s28, 0 }
  0x84   : > { %2921 = dma.done.wait (%p3610_p8), [#allocation6], 1024   ;;  %p3611_p2 = pmov %p3610_p8 }
  0x86   : > { %2923 = vsyncadd (%p3611_p2), [#allocation6], 4294966272  ;;  %p3612_p3 = pmov %p3611_p2 }
  0x87   : > { %p3613_p12 = pmov %p3611_p2 }
  0x88   : > { %2925 = dma.done.wait (%p3612_p3), [#allocation9], 4096  }
  0x89   : > { %2927 = vsyncadd (%p3613_p12), [#allocation9], 4294963200  ;;  %v2648_v0 = vld [vmem:[#allocation8 + $0x38] sm:$0xff]   ;;  %v2649_v1 = vld [vmem:[#allocation8 + $0x30] sm:$0xff]   ;;  %s3433_s11 = scalar_lea.vmem [#allocation11], %s2108_s19  ;;  %s2183_s17 = sshll.u32 %s3021_s28, 12 }
  0x8a   : > { %2544 = vmatprep.subr.bf16.mxu1 %v2648_v0  ;;  %2304 = vmatprep.subr.bf16.mxu0 %v2648_v0  ;;  %v2650_v2 = vld [vmem:[#allocation8 + $0x28] sm:$0xff]   ;;  %v2651_v3 = vld [vmem:[#allocation8 + $0x20] sm:$0xff]   ;;  %v2652_v5 = vld [vmem:[#allocation8 + $0x18] sm:$0xff]   ;;  %s1971_s16 = sshll.u32 %s3433_s11, 4  ;;  %s3530_s3 = scalar_lea.hbm %s3585_s7, %s2183_s17  ;;  %s3532_s16 = int_to_ptr.vmem [resolvable:$true] %s1971_s16 }
  0x8b   : > { %2552 = vmatpush3.bf16.msra.mxu1 %v2648_v0  ;;  %2305 = vmatpush3.bf16.msra.mxu0 %v2648_v0  ;;  %v2656_v4 = vld [vmem:[%s3202_s15 + $0x40] sm:$0xff]   ;;  %v2653_v6 = vld [vmem:[#allocation8 + $0x10] sm:$0xff]   ;;  %v2654_v7 = vld [vmem:[#allocation8 + $0x8] sm:$0xff]   ;;  %s1958_s28 = scalar_lea.sflag [#allocation4], %s3188_s22  ;;  %s2870_s5 = scalar_lea.vmem %s3532_s16, 4096 }
  0x8c   : > { %2545 = vmatprep.subr.bf16.mxu1 %v2649_v1  ;;  %2306 = vmatprep.subr.bf16.mxu0 %v2649_v1  ;;  %v2671_v8 = vld [vmem:[%s3202_s15] sm:$0xff]   ;;  %v2658_v10 = vld [vmem:[#allocation7 + $0x38] sm:$0xff]   ;;  %v2657_v11 = vld [vmem:[%s3202_s15 + $0x48] sm:$0xff]   ;;  %p2871_p9 = scmp.ne.s32.totalorder %s3532_s16, %s2870_s5  ;;  %p3614_p13 = scmp.ne.s32.totalorder %s3603_s20, 0 }
  0x8d   : > { %2336 = vmatprep.mubr.bf16.mxu1 %v2656_v4  ;;  %v2655_v9 = vld [vmem:[#allocation8] sm:$0xff]   ;;  %2320 = vmatprep.mubr.bf16.mxu0 %v2671_v8  ;;  %v2672_v12 = vld [vmem:[%s3202_s15 + $0x8] sm:$0xff]   ;;  %v2660_v13 = vld [vmem:[%s3202_s15 + $0x50] sm:$0xff]   ;;  %s2957_s9 = smov [#allocation11]  }
  0x8e   : > { %v2659_v14 = vld [vmem:[#allocation7 + $0x30] sm:$0xff]   ;;  %v2662_v16 = vld [vmem:[#allocation7 + $0x28] sm:$0xff]   ;;  %v2661_v17 = vld [vmem:[%s3202_s15 + $0x58] sm:$0xff]   ;;  %p2872_p0 = pnand %p2871_p9, %p3614_p13 }
  0x8f   : > { %2553 = vmatpush3.bf16.msra.mxu1 %v2649_v1  ;;  %2307 = vmatpush3.bf16.msra.mxu0 %v2649_v1  ;;  %v2674_v15 = vld [vmem:[%s3202_s15 + $0x10] sm:$0xff]   ;;  %v2675_v18 = vld [vmem:[%s3202_s15 + $0x18] sm:$0xff]   ;;  %v2664_v19 = vld [vmem:[%s3202_s15 + $0x60] sm:$0xff]  }
  0x90   : > { %2546 = vmatprep.subr.bf16.mxu1 %v2650_v2  ;;  %2308 = vmatprep.subr.bf16.mxu0 %v2650_v2  ;;  %v2663_v20 = vld [vmem:[#allocation7 + $0x20] sm:$0xff]   ;;  %v2666_v22 = vld [vmem:[#allocation7 + $0x18] sm:$0xff]   ;;  %v2665_v23 = vld [vmem:[%s3202_s15 + $0x68] sm:$0xff]   ;;  %p2873_p11 = pneg %p2872_p0 }
  0x91   : > { %v2676_v21 = vld [vmem:[%s3202_s15 + $0x20] sm:$0xff]   ;;  %v2677_v24 = vld [vmem:[%s3202_s15 + $0x28] sm:$0xff]   ;;  %v2668_v25 = vld [vmem:[%s3202_s15 + $0x70] sm:$0xff]  }
  0x92   : > { %v2667_v26 = vld [vmem:[#allocation7 + $0x10] sm:$0xff]   ;;  %v2670_v28 = vld [vmem:[#allocation7 + $0x8] sm:$0xff]   ;;  %v384_v29 = vld [vmem:[%s3194_s12] sm:$0xff] }
  0x93   : > { %2554 = vmatpush3.bf16.msra.mxu1 %v2650_v2  ;;  %2309 = vmatpush3.bf16.msra.mxu0 %v2650_v2  ;;  %v2678_v27 = vld [vmem:[%s3202_s15 + $0x30] sm:$0xff]   ;;  %v385_v30 = vld [vmem:[%s3194_s12 + $0x8] sm:$0xff]  ;;  %v2669_v31 = vld [vmem:[%s3202_s15 + $0x78] sm:$0xff]  }
  0x94   : > { %2547 = vmatprep.subr.bf16.mxu1 %v2651_v3  ;;  %2310 = vmatprep.subr.bf16.mxu0 %v2651_v3  ;;  %v2679_v32 = vld [vmem:[%s3202_s15 + $0x38] sm:$0xff]   ;;  %v2673_v33 = vld [vmem:[#allocation7] sm:$0xff]   ;;  %v416_v34 = vpack.c.bf16 %v385_v30, %v384_v29  ;;  %v386_v35 = vld [vmem:[%s3194_s12 + $0x10] sm:$0xff]  ;;  %s2874_s15 = sshll.u32 %s2957_s9, 4  ;;  %s2875_s15 = int_to_ptr.vmem [resolvable:$false] %s2874_s15 }
  0x95   : > { %v387_v36 = vld [vmem:[%s3194_s12 + $0x18] sm:$0xff]  ;;  %v388_v37 = vld [vmem:[%s3194_s12 + $0x20] sm:$0xff]  ;;  %v389_v38 = vld [vmem:[%s3194_s12 + $0x28] sm:$0xff]  ;;  %s2876_s30 = scalar_lea.vmem %s2875_s15, 8192  ;;  %p2877_p10 = scmp.lt.s32.totalorder %s3532_s16, %s2875_s15 }
  0x96   : > { %v417_v39 = vpack.c.bf16 %v387_v36, %v386_v35  ;;  %v418_v40 = vpack.c.bf16 %v389_v38, %v388_v37  ;;  %v390_v41 = vld [vmem:[%s3194_s12 + $0x30] sm:$0xff]  ;;  %v391_v42 = vld [vmem:[%s3194_s12 + $0x38] sm:$0xff]  ;;  %v392_v43 = vld [vmem:[%s3194_s12 + $0x40] sm:$0xff]  ;;  %p2878_p1 = scmp.lt.s32.totalorder %s2876_s30, %s2870_s5 }
  0x97   : > { %2555 = vmatpush3.bf16.msra.mxu1 %v2651_v3  ;;  %2311 = vmatpush3.bf16.msra.mxu0 %v2651_v3  ;;  %v393_v44 = vld [vmem:[%s3194_s12 + $0x48] sm:$0xff]  ;;  %v419_v45 = vpack.c.bf16 %v391_v42, %v390_v41  ;;  %v394_v47 = vld [vmem:[%s3194_s12 + $0x50] sm:$0xff]  ;;  %v395_v48 = vld [vmem:[%s3194_s12 + $0x58] sm:$0xff] }
  0x98   : > { %2548 = vmatprep.subr.bf16.mxu1 %v2652_v5  ;;  %2312 = vmatprep.subr.bf16.mxu0 %v2652_v5  ;;  %v420_v46 = vpack.c.bf16 %v393_v44, %v392_v43  ;;  %v396_v49 = vld [vmem:[%s3194_s12 + $0x60] sm:$0xff]  ;;  %v397_v50 = vld [vmem:[%s3194_s12 + $0x68] sm:$0xff]  ;;  %v421_v51 = vpack.c.bf16 %v395_v48, %v394_v47  ;;  %v398_v53 = vld [vmem:[%s3194_s12 + $0x70] sm:$0xff]  ;;  %p2879_p4 = por %p2878_p1, %p2877_p10 }
  0x99   : > { %v422_v52 = vpack.c.bf16 %v397_v50, %v396_v49  ;;  %v399_v54 = vld [vmem:[%s3194_s12 + $0x78] sm:$0xff]  ;;  %v400_v55 = vld [vmem:[%s3194_s12 + $0x80] sm:$0xff]  ;;  %v401_v56 = vld [vmem:[%s3194_s12 + $0x88] sm:$0xff] }
  0x9a   : > { %v423_v57 = vpack.c.bf16 %v399_v54, %v398_v53  ;;  %v424_v58 = vpack.c.bf16 %v401_v56, %v400_v55  ;;  %v402_v59 = vld [vmem:[%s3194_s12 + $0x90] sm:$0xff]  ;;  %v403_v60 = vld [vmem:[%s3194_s12 + $0x98] sm:$0xff]  ;;  %v404_v61 = vld [vmem:[%s3194_s12 + $0xa0] sm:$0xff]  ;;  %p2880_p6 = pnand %p2879_p4, %p2873_p11 }
  0x9b   : > { %2556 = vmatpush3.bf16.msra.mxu1 %v2652_v5  ;;  %2313 = vmatpush3.bf16.msra.mxu0 %v2652_v5  ;;  %v405_v62 = vld [vmem:[%s3194_s12 + $0xa8] sm:$0xff]  ;;  %v425_v63 = vpack.c.bf16 %v403_v60, %v402_v59  ;;  %v406_v1 = vld [vmem:[%s3194_s12 + $0xb0] sm:$0xff]  ;;  %v407_v2 = vld [vmem:[%s3194_s12 + $0xb8] sm:$0xff] }
  0x9c   : > { %2549 = vmatprep.subr.bf16.mxu1 %v2653_v6  ;;  %2314 = vmatprep.subr.bf16.mxu0 %v2653_v6  ;;  %v426_v0 = vpack.c.bf16 %v405_v62, %v404_v61  ;;  %v408_v3 = vld [vmem:[%s3194_s12 + $0xc0] sm:$0xff]  ;;  %v409_v4 = vld [vmem:[%s3194_s12 + $0xc8] sm:$0xff]  ;;  %v427_v5 = vpack.c.bf16 %v407_v2, %v406_v1  ;;  %v411_v8 = vld [vmem:[%s3194_s12 + $0xd8] sm:$0xff] }
  0x9d   : > { %v2693_v29 = vld [vmem:[#allocation10 + $0x50] sm:$0xff]   ;;  %v2694_v30 = vld [vmem:[#allocation10 + $0x48] sm:$0xff]   ;;  %v3299_v61 = vld [vmem:[%s3582_s4] ss:$0 sm:$0xff] }
  0x9f   : > { %2557 = vmatpush3.bf16.msra.mxu1 %v2653_v6  ;;  %2315 = vmatpush3.bf16.msra.mxu0 %v2653_v6  ;;  %v428_v6 = vpack.c.bf16 %v409_v4, %v408_v3 }
  0xa0   : > { %2550 = vmatprep.subr.bf16.mxu1 %v2654_v7  ;;  %2316 = vmatprep.subr.bf16.mxu0 %v2654_v7 }
  0xa3   : > { %2558 = vmatpush3.bf16.msra.mxu1 %v2654_v7  ;;  %2317 = vmatpush3.bf16.msra.mxu0 %v2654_v7  ;;  %v410_v7 = vld [vmem:[%s3194_s12 + $0xd0] sm:$0xff] }
  0xa4   : > { %2551 = vmatprep.subr.bf16.mxu1 %v2655_v9  ;;  %2318 = vmatprep.subr.bf16.mxu0 %v2655_v9 }
  0xa7   : > { %2559 = vmatpush3.bf16.msra.mxu1 %v2655_v9  ;;  %2319 = vmatpush3.bf16.msra.mxu0 %v2655_v9  ;;  %v412_v9 = vld [vmem:[%s3194_s12 + $0xe0] sm:$0xff] }
  0xa8   : > { %2352 = vmatprep.subr.bf16.mxu1 %v2658_v10 }
  0xaa   : > { %2337 = vmatmul.mubr.bf16.vlgmr.msra.gmra.mxu1 %v2657_v11  ;;  %2321 = vmatmul.mubr.bf16.vlgmr.msra.gmra.mxu0 %v2672_v12  ;;  %v429_v11 = vpack.c.bf16 %v411_v8, %v410_v7 }
  0xab   : > { %2353 = vmatpush3.bf16.msra.mxu1 %v2658_v10  ;;  %2340 = vmatprep.mubr.bf16.mxu1 %v2660_v13  ;;  %v413_v10 = vld [vmem:[%s3194_s12 + $0xe8] sm:$0xff]  ;;  %v2680_v13 = vld [vmem:[#allocation10 + $0x38] sm:$0xff]  }
  0xac   : > { %2354 = vmatprep.subr.bf16.mxu1 %v2659_v14  ;;  %2324 = vmatprep.mubr.bf16.mxu0 %v2674_v15  ;;  %v430_v12 = vpack.c.bf16 %v413_v10, %v412_v9  ;;  %v415_v15 = vld [vmem:[%s3194_s12 + $0xf8] sm:$0xff] }
  0xad   : > { %2400 = vmatprep.subr.bf16.mxu0 %v2680_v13 }
  0xae   : > { %2401 = vmatpush3.bf16.msra.mxu0 %v2680_v13 }
  0xaf   : > { %2355 = vmatpush3.bf16.msra.mxu1 %v2659_v14  ;;  %v414_v14 = vld [vmem:[%s3194_s12 + $0xf0] sm:$0xff] }
  0xb0   : > { %2356 = vmatprep.subr.bf16.mxu1 %v2662_v16 }
  0xb2   : > { %2341 = vmatmul.mubr.bf16.gmra.mxu1 %v2661_v17  ;;  %2325 = vmatmul.mubr.bf16.gmra.mxu0 %v2675_v18  ;;  %v431_v17 = vpack.c.bf16 %v415_v15, %v414_v14  ;;  %v2682_v18 = vld [vmem:[#allocation10 + $0x28] sm:$0xff]  }
  0xb3   : > { %2357 = vmatpush3.bf16.msra.mxu1 %v2662_v16  ;;  %2344 = vmatprep.mubr.bf16.mxu1 %v2664_v19  ;;  %v2681_v16 = vld [vmem:[#allocation10 + $0x30] sm:$0xff]   ;;  %v2683_v19 = vld [vmem:[#allocation10 + $0x20] sm:$0xff]  }
  0xb4   : > { %2358 = vmatprep.subr.bf16.mxu1 %v2663_v20  ;;  %2328 = vmatprep.mubr.bf16.mxu0 %v2676_v21  ;;  %v2685_v21 = vld [vmem:[#allocation10 + $0x10] sm:$0xff]  }
  0xb5   : > { %2402 = vmatprep.subr.bf16.mxu0 %v2681_v16 }
  0xb6   : > { %2403 = vmatpush3.bf16.msra.mxu0 %v2681_v16 }
  0xb7   : > { %2359 = vmatpush3.bf16.msra.mxu1 %v2663_v20  ;;  %2404 = vmatprep.subr.bf16.mxu0 %v2682_v18  ;;  %v2684_v20 = vld [vmem:[#allocation10 + $0x18] sm:$0xff]  }
  0xb8   : > { %2360 = vmatprep.subr.bf16.mxu1 %v2666_v22 }
  0xba   : > { %2345 = vmatmul.mubr.bf16.gmra.mxu1 %v2665_v23  ;;  %2329 = vmatmul.mubr.bf16.gmra.mxu0 %v2677_v24  ;;  %v2687_v23 = vld [vmem:[#allocation10] sm:$0xff]   ;;  %v2688_v24 = vld [vmem:[#allocation10 + $0x78] sm:$0xff]  }
  0xbb   : > { %2361 = vmatpush3.bf16.msra.mxu1 %v2666_v22  ;;  %2348 = vmatprep.mubr.bf16.mxu1 %v2668_v25  ;;  %v2686_v22 = vld [vmem:[#allocation10 + $0x8] sm:$0xff]   ;;  %v2689_v25 = vld [vmem:[#allocation10 + $0x70] sm:$0xff]  }
  0xbc   : > { %2362 = vmatprep.subr.bf16.mxu1 %v2667_v26  ;;  %2332 = vmatprep.mubr.bf16.mxu0 %v2678_v27  ;;  %v2691_v27 = vld [vmem:[#allocation10 + $0x60] sm:$0xff]  }
  0xbd   : > { %2405 = vmatpush3.bf16.msra.mxu0 %v2682_v18 }
  0xbe   : > { %2406 = vmatprep.subr.bf16.mxu0 %v2683_v19 }
  0xbf   : > { %2363 = vmatpush3.bf16.msra.mxu1 %v2667_v26  ;;  %v2690_v26 = vld [vmem:[#allocation10 + $0x68] sm:$0xff]  }
  0xc0   : > { %2364 = vmatprep.subr.bf16.mxu1 %v2670_v28 }
  0xc1   : > { %2407 = vmatpush3.bf16.msra.mxu0 %v2683_v19 }
  0xc2   : > { %2349 = vmatmul.mubr.bf16.gmra.mxu1 %v2669_v31  ;;  %2333 = vmatmul.mubr.bf16.gmra.mxu0 %v2679_v32 }
  0xc3   : > { %2365 = vmatpush3.bf16.msra.mxu1 %v2670_v28  ;;  %2368 = vmatprep.mubr.bf16.mxu1 %v416_v34  ;;  %v2692_v28 = vld [vmem:[#allocation10 + $0x58] sm:$0xff]  }
  0xc4   : > { %2366 = vmatprep.subr.bf16.mxu1 %v2673_v33  ;;  %2408 = vmatprep.subr.bf16.mxu0 %v2684_v20 }
  0xc5   : > { %2409 = vmatpush3.bf16.msra.mxu0 %v2684_v20 }
  0xc6   : > { %2410 = vmatprep.subr.bf16.mxu0 %v2685_v21 }
  0xc7   : > { %2367 = vmatpush3.bf16.msra.mxu1 %v2673_v33 }
  0xc8   : > { %2448 = vmatprep.subr.bf16.mxu1 %v2688_v24 }
  0xc9   : > { %2411 = vmatpush3.bf16.msra.mxu0 %v2685_v21 }
  0xca   : > { %2369 = vmatmul.mubr.bf16.vlgmr.msra.gmra.mxu1 %v417_v39  ;;  %2412 = vmatprep.subr.bf16.mxu0 %v2686_v22 }
  0xcb   : > { %2372 = vmatprep.mubr.bf16.mxu1 %v418_v40  ;;  %2449 = vmatpush3.bf16.msra.mxu1 %v2688_v24 }
  0xcc   : > { %2450 = vmatprep.subr.bf16.mxu1 %v2689_v25 }
  0xcd   : > { %2413 = vmatpush3.bf16.msra.mxu0 %v2686_v22 }
  0xce   : > { %2414 = vmatprep.subr.bf16.mxu0 %v2687_v23 }
  0xcf   : > { %2451 = vmatpush3.bf16.msra.mxu1 %v2689_v25 }
  0xd0   : > { %2452 = vmatprep.subr.bf16.mxu1 %v2690_v26 }
  0xd1   : > { %2415 = vmatpush3.bf16.msra.mxu0 %v2687_v23 }
  0xd2   : > { %2373 = vmatmul.mubr.bf16.gmra.mxu1 %v419_v45 }
  0xd3   : > { %2376 = vmatprep.mubr.bf16.mxu1 %v420_v46  ;;  %2453 = vmatpush3.bf16.msra.mxu1 %v2690_v26 }
  0xd4   : > { %2454 = vmatprep.subr.bf16.mxu1 %v2691_v27 }
  0xd7   : > { %2455 = vmatpush3.bf16.msra.mxu1 %v2691_v27 }
  0xd8   : > { %2456 = vmatprep.subr.bf16.mxu1 %v2692_v28 }
  0xda   : > { %2377 = vmatmul.mubr.bf16.gmra.mxu1 %v421_v51 }
  0xdb   : > { %2380 = vmatprep.mubr.bf16.mxu1 %v422_v52  ;;  %2457 = vmatpush3.bf16.msra.mxu1 %v2692_v28 }
  0xdc   : > { %2458 = vmatprep.subr.bf16.mxu1 %v2693_v29 }
  0xdf   : > { %2459 = vmatpush3.bf16.msra.mxu1 %v2693_v29 }
  0xe0   : > { %2460 = vmatprep.subr.bf16.mxu1 %v2694_v30 }
  0xe2   : > { %2381 = vmatmul.mubr.bf16.gmra.mxu1 %v423_v57 }
  0xe3   : > { %2384 = vmatprep.mubr.bf16.mxu1 %v424_v58  ;;  %2461 = vmatpush3.bf16.msra.mxu1 %v2694_v30 }
  0xea   : > { %2385 = vmatmul.mubr.bf16.gmra.mxu1 %v425_v63 }
  0xeb   : > { %2388 = vmatprep.mubr.bf16.mxu1 %v426_v0 }
  0xf2   : > { %2389 = vmatmul.mubr.bf16.gmra.mxu1 %v427_v5 }
  0xf3   : > { %2392 = vmatprep.mubr.bf16.mxu1 %v428_v6 }
  0xfa   : > { %2393 = vmatmul.mubr.bf16.gmra.mxu1 %v429_v11 }
  0xfb   : > { %2396 = vmatprep.mubr.bf16.mxu1 %v430_v12 }
 0x102   : > { %2397 = vmatmul.mubr.bf16.gmra.mxu1 %v431_v17 }
 0x16a   : > { %v3264_v31 = vpop.f32.mrf.mxu1  ;;  %v2322_v33 = vpop.f32.mrf.mxu0 }
 0x16c   : > { %v3266_v32 = vpop.f32.mrf.mxu1  ;;  %v674_v36 = vpop.f32.mrf.mxu0 }
 0x16e   : > { %v3268_v34 = vpop.f32.mrf.mxu1  ;;  %v2323_v39 = vpop.f32.mrf.mxu0 }
 0x170   : > { %v3270_v35 = vpop.f32.mrf.mxu1  ;;  %v677_v42 = vpop.f32.mrf.mxu0 }
 0x172   : > { %v3272_v37 = vpop.f32.mrf.mxu1  ;;  %v2326_v45 = vpop.f32.mrf.mxu0 }
 0x174   : > { %v3274_v38 = vpop.f32.mrf.mxu1  ;;  %v690_v48 = vpop.f32.mrf.mxu0 }
 0x176   : > { %v3276_v40 = vpop.f32.mrf.mxu1  ;;  %v2327_v51 = vpop.f32.mrf.mxu0 }
 0x178   : > { %v3278_v41 = vpop.f32.mrf.mxu1  ;;  %v693_v54 = vpop.f32.mrf.mxu0 }
 0x17a   : > { %v3280_v43 = vpop.f32.mrf.mxu1  ;;  %v2330_v57 = vpop.f32.mrf.mxu0 }
 0x17c   : > { %v3282_v44 = vpop.f32.mrf.mxu1  ;;  %v706_v0 = vpop.f32.mrf.mxu0 }
 0x17e   : > { %v3284_v46 = vpop.f32.mrf.mxu1  ;;  %v2331_v9 = vpop.f32.mrf.mxu0 }
 0x180   : > { %v3286_v47 = vpop.f32.mrf.mxu1  ;;  %v709_v20 = vpop.f32.mrf.mxu0 }
 0x182   : > { %v3288_v49 = vpop.f32.mrf.mxu1  ;;  %v2334_v29 = vpop.f32.mrf.mxu0 }
 0x184   : > { %v3290_v50 = vpop.f32.mrf.mxu1 }
 0x186   : > { %v3292_v52 = vpop.f32.mrf.mxu1 }
 0x188   : > { %v3294_v53 = vpop.f32.mrf.mxu1 }
 0x18a   : > { %v2370_v55 = vpop.f32.mrf.mxu1 }
 0x18b   : > { %v892_v59 = vadd.f32 %v2370_v55, %v2322_v33  ;;  %v722_v55 = vpop.f32.mrf.mxu0 }
 0x18c   : > { %v883_v56 = vpop.f32.mrf.mxu1 }
 0x18d   : > { %v884_v58 = vadd.f32 %v883_v56, %v674_v36  ;;  %v1019_v4 = vadd.f32 %v3299_v61, %v892_v59 }
 0x18e   : > { %v2371_v60 = vpop.f32.mrf.mxu1 }
 0x18f   : > { %v895_v62 = vadd.f32 %v2371_v60, %v2323_v39  ;;  %v1017_v1 = vadd.f32 %v3299_v61, %v884_v58  ;;  %v1051_v13 = vmax.f32 %v1019_v4, 0.0 }
 0x190   : > { %v886_v63 = vpop.f32.mrf.mxu1 }
 0x191   : > { %v1020_v2 = vadd.f32 %v3299_v61, %v895_v62  ;;  %v887_v3 = vadd.f32 %v886_v63, %v677_v42  ;;  %v1049_v10 = vmax.f32 %v1017_v1, 0.0 }
 0x192   : > { %v2374_v5 = vpop.f32.mrf.mxu1 }
 0x193   : > { %v1018_v6 = vadd.f32 %v3299_v61, %v887_v3  ;;  %v1052_v7 = vmax.f32 %v1020_v2, 0.0  ;;  %v908_v14 = vadd.f32 %v2374_v5, %v2326_v45 }
 0x194   : > { %v899_v8 = vpop.f32.mrf.mxu1 }
 0x195   : > { %v1050_v11 = vmax.f32 %v1018_v6, 0.0  ;;  %v900_v12 = vadd.f32 %v899_v8, %v690_v48  ;;  %v1082_v18 = vpack.c.bf16 %v1052_v7, %v1051_v13  ;;  %v1023_v24 = vadd.f32 %v3299_v61, %v908_v14 }
 0x196   : > { %v2375_v15 = vpop.f32.mrf.mxu1 }
 0x197   : > { %v911_v16 = vadd.f32 %v2375_v15, %v2327_v51  ;;  %v1081_v17 = vpack.c.bf16 %v1050_v11, %v1049_v10  ;;  %v1021_v21 = vadd.f32 %v3299_v61, %v900_v12  ;;  %v1055_v39 = vmax.f32 %v1023_v24, 0.0 }
 0x198   : > { %v902_v19 = vpop.f32.mrf.mxu1 }
 0x199   : > { %v1024_v22 = vadd.f32 %v3299_v61, %v911_v16  ;;  %v903_v23 = vadd.f32 %v902_v19, %v693_v54  ;;  %2416 = vmatprep.mubr.bf16.mxu0 %v1081_v17  ;;  %v1053_v30 = vmax.f32 %v1021_v21, 0.0 }
 0x19a   : > { %v2378_v25 = vpop.f32.mrf.mxu1  ;;  %2417 = vmatmul.mubr.bf16.vlgmr.msra.gmra.mxu0 %v1082_v18 }
 0x19b   : > { %v1022_v26 = vadd.f32 %v3299_v61, %v903_v23  ;;  %v1056_v27 = vmax.f32 %v1024_v22, 0.0  ;;  %v924_v42 = vadd.f32 %v2378_v25, %v2330_v57  ;;  %v2335_v57 = vpop.f32.mrf.mxu0 }
 0x19c   : > { %v915_v28 = vpop.f32.mrf.mxu1 }
 0x19d   : > { %v1054_v33 = vmax.f32 %v1022_v26, 0.0  ;;  %v916_v36 = vadd.f32 %v915_v28, %v706_v0  ;;  %v1084_v56 = vpack.c.bf16 %v1056_v27, %v1055_v39  ;;  %v1027_v62 = vadd.f32 %v3299_v61, %v924_v42  ;;  %v725_v11 = vpop.f32.mrf.mxu0 }
 0x19e   : > { %v2379_v45 = vpop.f32.mrf.mxu1 }
 0x19f   : > { %v927_v48 = vadd.f32 %v2379_v45, %v2331_v9  ;;  %v1083_v51 = vpack.c.bf16 %v1054_v33, %v1053_v30  ;;  %v1025_v58 = vadd.f32 %v3299_v61, %v916_v36  ;;  %v1059_v6 = vmax.f32 %v1027_v62, 0.0 }
 0x1a0   : > { %v918_v54 = vpop.f32.mrf.mxu1 }
 0x1a1   : > { %v1028_v59 = vadd.f32 %v3299_v61, %v927_v48  ;;  %v919_v60 = vadd.f32 %v918_v54, %v709_v20  ;;  %2420 = vmatprep.mubr.bf16.mxu0 %v1083_v51  ;;  %v1057_v3 = vmax.f32 %v1025_v58, 0.0 }
 0x1a2   : > { %v2382_v63 = vpop.f32.mrf.mxu1  ;;  %2421 = vmatmul.mubr.bf16.gmra.mxu0 %v1084_v56 }
 0x1a3   : > { %v1026_v0 = vadd.f32 %v3299_v61, %v919_v60  ;;  %v1060_v1 = vmax.f32 %v1028_v59, 0.0  ;;  %v940_v7 = vadd.f32 %v2382_v63, %v2334_v29 }
 0x1a4   : > { %v931_v2 = vpop.f32.mrf.mxu1 }
 0x1a5   : > { %v1058_v4 = vmax.f32 %v1026_v0, 0.0  ;;  %v932_v5 = vadd.f32 %v931_v2, %v722_v55  ;;  %v1086_v13 = vpack.c.bf16 %v1060_v1, %v1059_v6  ;;  %v1031_v17 = vadd.f32 %v3299_v61, %v940_v7 }
 0x1a6   : > { %v2383_v8 = vpop.f32.mrf.mxu1 }
 0x1a7   : > { %v943_v9 = vadd.f32 %v2383_v8, %v2335_v57  ;;  %v1085_v10 = vpack.c.bf16 %v1058_v4, %v1057_v3  ;;  %v1029_v14 = vadd.f32 %v3299_v61, %v932_v5  ;;  %v1063_v26 = vmax.f32 %v1031_v17, 0.0 }
 0x1a8   : > { %v934_v12 = vpop.f32.mrf.mxu1 }
 0x1a9   : > { %v1032_v15 = vadd.f32 %v3299_v61, %v943_v9  ;;  %v935_v16 = vadd.f32 %v934_v12, %v725_v11  ;;  %2424 = vmatprep.mubr.bf16.mxu0 %v1085_v10  ;;  %v1061_v23 = vmax.f32 %v1029_v14, 0.0 }
 0x1aa   : > { %v2386_v18 = vpop.f32.mrf.mxu1  ;;  %2425 = vmatmul.mubr.bf16.gmra.mxu0 %v1086_v13 }
 0x1ab   : > { %v1030_v19 = vadd.f32 %v3299_v61, %v935_v16  ;;  %v956_v20 = vadd.f32 %v2386_v18, %v3264_v31  ;;  %v1064_v21 = vmax.f32 %v1032_v15, 0.0 }
 0x1ac   : > { %v947_v22 = vpop.f32.mrf.mxu1 }
 0x1ad   : > { %v1062_v24 = vmax.f32 %v1030_v19, 0.0  ;;  %v948_v25 = vadd.f32 %v947_v22, %v3266_v32  ;;  %v1035_v28 = vadd.f32 %v3299_v61, %v956_v20  ;;  %v1088_v36 = vpack.c.bf16 %v1064_v21, %v1063_v26 }
 0x1ae   : > { %v2387_v27 = vpop.f32.mrf.mxu1 }
 0x1af   : > { %v959_v29 = vadd.f32 %v2387_v27, %v3268_v34  ;;  %v1087_v30 = vpack.c.bf16 %v1062_v24, %v1061_v23  ;;  %v1033_v39 = vadd.f32 %v3299_v61, %v948_v25  ;;  %v1067_v48 = vmax.f32 %v1035_v28, 0.0 }
 0x1b0   : > { %v950_v33 = vpop.f32.mrf.mxu1 }
 0x1b1   : > { %v1036_v42 = vadd.f32 %v3299_v61, %v959_v29  ;;  %v951_v31 = vadd.f32 %v950_v33, %v3270_v35  ;;  %2428 = vmatprep.mubr.bf16.mxu0 %v1087_v30  ;;  %v1065_v34 = vmax.f32 %v1033_v39, 0.0 }
 0x1b2   : > { %v2390_v45 = vpop.f32.mrf.mxu1  ;;  %2429 = vmatmul.mubr.bf16.gmra.mxu0 %v1088_v36 }
 0x1b3   : > { %v1068_v32 = vmax.f32 %v1036_v42, 0.0  ;;  %v1034_v51 = vadd.f32 %v3299_v61, %v951_v31  ;;  %v972_v55 = vadd.f32 %v2390_v45, %v3272_v37  ;;  %v2696_v45 = vld [vmem:[#allocation10 + $0xb8] sm:$0xff]  }
 0x1b4   : > { %v963_v54 = vpop.f32.mrf.mxu1  ;;  %2496 = vmatprep.subr.bf16.mxu0 %v2696_v45 }
 0x1b5   : > { %v1066_v56 = vmax.f32 %v1034_v51, 0.0  ;;  %v964_v58 = vadd.f32 %v963_v54, %v3274_v38  ;;  %v1090_v59 = vpack.c.bf16 %v1068_v32, %v1067_v48  ;;  %v1039_v62 = vadd.f32 %v3299_v61, %v972_v55  ;;  %v2697_v48 = vld [vmem:[#allocation10 + $0xb0] sm:$0xff]   ;;  %2497 = vmatpush3.bf16.msra.mxu0 %v2696_v45  ;;  %v2699_v32 = vld [vmem:[#allocation10 + $0xa0] sm:$0xff]   ;;  %v2702_v55 = vld [vmem:[#allocation10 + $0x88] sm:$0xff]  }
 0x1b6   : > { %v2391_v60 = vpop.f32.mrf.mxu1  ;;  %2498 = vmatprep.subr.bf16.mxu0 %v2697_v48  ;;  %v2701_v51 = vld [vmem:[#allocation10 + $0x90] sm:$0xff]  }
 0x1b7   : > { %v975_v35 = vadd.f32 %v2391_v60, %v3276_v40  ;;  %v1089_v63 = vpack.c.bf16 %v1066_v56, %v1065_v34  ;;  %v1037_v1 = vadd.f32 %v3299_v61, %v964_v58  ;;  %v1071_v3 = vmax.f32 %v1039_v62, 0.0  ;;  %v3352_v56 = vld [vmem:[%s3584_s6] ss:$0 sm:$0xff] }
 0x1b8   : > { %v966_v0 = vpop.f32.mrf.mxu1 }
 0x1b9   : > { %v1040_v57 = vadd.f32 %v3299_v61, %v975_v35  ;;  %v967_v2 = vadd.f32 %v966_v0, %v3278_v41  ;;  %2432 = vmatprep.mubr.bf16.mxu0 %v1089_v63  ;;  %v1069_v7 = vmax.f32 %v1037_v1, 0.0  ;;  %2499 = vmatpush3.bf16.msra.mxu0 %v2697_v48 }
 0x1ba   : > { %v2394_v37 = vpop.f32.mrf.mxu1  ;;  %2433 = vmatmul.mubr.bf16.gmra.mxu0 %v1090_v59 }
 0x1bb   : > { %v1072_v4 = vmax.f32 %v1040_v57, 0.0  ;;  %v1038_v38 = vadd.f32 %v3299_v61, %v967_v2  ;;  %v988_v5 = vadd.f32 %v2394_v37, %v3280_v43 }
 0x1bc   : > { %v979_v6 = vpop.f32.mrf.mxu1 }
 0x1bd   : > { %v1070_v40 = vmax.f32 %v1038_v38, 0.0  ;;  %v980_v8 = vadd.f32 %v979_v6, %v3282_v44  ;;  %v1092_v9 = vpack.c.bf16 %v1072_v4, %v1071_v3  ;;  %v1043_v11 = vadd.f32 %v3299_v61, %v988_v5 }
 0x1be   : > { %v2395_v10 = vpop.f32.mrf.mxu1 }
 0x1bf   : > { %v991_v41 = vadd.f32 %v2395_v10, %v3284_v46  ;;  %v1091_v12 = vpack.c.bf16 %v1070_v40, %v1069_v7  ;;  %v1041_v14 = vadd.f32 %v3299_v61, %v980_v8  ;;  %v1075_v17 = vmax.f32 %v1043_v11, 0.0 }
 0x1c0   : > { %v982_v13 = vpop.f32.mrf.mxu1 }
 0x1c1   : > { %v1044_v15 = vadd.f32 %v3299_v61, %v991_v41  ;;  %v983_v16 = vadd.f32 %v982_v13, %v3286_v47  ;;  %2436 = vmatprep.mubr.bf16.mxu0 %v1091_v12  ;;  %v1073_v21 = vmax.f32 %v1041_v14, 0.0 }
 0x1c2   : > { %v2398_v43 = vpop.f32.mrf.mxu1  ;;  %2437 = vmatmul.mubr.bf16.gmra.mxu0 %v1092_v9 }
 0x1c3   : > { %v1076_v18 = vmax.f32 %v1044_v15, 0.0  ;;  %v1042_v44 = vadd.f32 %v3299_v61, %v983_v16  ;;  %v1004_v19 = vadd.f32 %v2398_v43, %v3288_v49 }
 0x1c4   : > { %v995_v20 = vpop.f32.mrf.mxu1 }
 0x1c5   : > { %v1074_v46 = vmax.f32 %v1042_v44, 0.0  ;;  %v996_v22 = vadd.f32 %v995_v20, %v3290_v50  ;;  %v1094_v23 = vpack.c.bf16 %v1076_v18, %v1075_v17  ;;  %v1047_v25 = vadd.f32 %v3299_v61, %v1004_v19 }
 0x1c6   : > { %v2399_v24 = vpop.f32.mrf.mxu1 }
 0x1c7   : > { %v1007_v47 = vadd.f32 %v2399_v24, %v3292_v52  ;;  %v1093_v26 = vpack.c.bf16 %v1074_v46, %v1073_v21  ;;  %v1045_v28 = vadd.f32 %v3299_v61, %v996_v22  ;;  %v1079_v49 = vmax.f32 %v1047_v25, 0.0  ;;  %v2695_v52 = vld [vmem:[#allocation10 + $0x40] sm:$0xff]  }
 0x1c8   : > { %v998_v27 = vpop.f32.mrf.mxu1  ;;  %2462 = vmatprep.subr.bf16.mxu1 %v2695_v52 }
 0x1c9   : > { %v1048_v29 = vadd.f32 %v3299_v61, %v1007_v47  ;;  %v999_v30 = vadd.f32 %v998_v27, %v3294_v53  ;;  %2440 = vmatprep.mubr.bf16.mxu0 %v1093_v26  ;;  %v1077_v36 = vmax.f32 %v1045_v28, 0.0  ;;  %2463 = vmatpush3.bf16.msra.mxu1 %v2695_v52  ;;  %v2698_v53 = vld [vmem:[#allocation10 + $0xa8] sm:$0xff]  }
 0x1ca   : > { %2441 = vmatmul.mubr.bf16.gmra.mxu0 %v1094_v23  ;;  %2500 = vmatprep.subr.bf16.mxu0 %v2698_v53 }
 0x1cb   : > { %v1080_v33 = vmax.f32 %v1048_v29, 0.0  ;;  %v1046_v50 = vadd.f32 %v3299_v61, %v999_v30  ;;  %2501 = vmatpush3.bf16.msra.mxu0 %v2698_v53  ;;  %v2700_v61 = vld [vmem:[#allocation10 + $0x98] sm:$0xff]  }
 0x1cc   : > { %2502 = vmatprep.subr.bf16.mxu0 %v2699_v32 }
 0x1cd   : > { %v1078_v39 = vmax.f32 %v1046_v50, 0.0  ;;  %v1096_v42 = vpack.c.bf16 %v1080_v33, %v1079_v49 }
 0x1cf   : > { %v1095_v31 = vpack.c.bf16 %v1078_v39, %v1077_v36  ;;  %2503 = vmatpush3.bf16.msra.mxu0 %v2699_v32 }
 0x1d0   : > { %2504 = vmatprep.subr.bf16.mxu0 %v2700_v61 }
 0x1d1   : > { %2444 = vmatprep.mubr.bf16.mxu0 %v1095_v31 }
 0x1d2   : > { %2445 = vmatmul.mubr.bf16.gmra.mxu0 %v1096_v42 }
 0x1d3   : > { %2505 = vmatpush3.bf16.msra.mxu0 %v2700_v61 }
 0x1d4   : > { %2506 = vmatprep.subr.bf16.mxu0 %v2701_v51 }
 0x1d7   : > { %2507 = vmatpush3.bf16.msra.mxu0 %v2701_v51 }
 0x1d8   : > { %2508 = vmatprep.subr.bf16.mxu0 %v2702_v55 }
 0x1db   : > { %2509 = vmatpush3.bf16.msra.mxu0 %v2702_v55 }
 0x25a   : > { %v2418_v54 = vpop.f32.mrf.mxu0 }
 0x25b   : > { %v1211_v62 = vadd.f32 %v2418_v54, %v3352_v56 }
 0x25c   : > { %v1202_v34 = vpop.f32.mrf.mxu0 }
 0x25d   : > { %v1203_v59 = vadd.f32 %v3352_v56, %v1202_v34  ;;  %v1331_v37 = vmax.f32 %v1211_v62, 0.0 }
 0x25e   : > { %v2419_v58 = vpop.f32.mrf.mxu0 }
 0x25f   : > { %v1214_v60 = vadd.f32 %v2419_v58, %v3352_v56  ;;  %v1329_v57 = vmax.f32 %v1203_v59, 0.0 }
 0x260   : > { %v1205_v35 = vpop.f32.mrf.mxu0 }
 0x261   : > { %v1206_v63 = vadd.f32 %v3352_v56, %v1205_v35  ;;  %v1332_v0 = vmax.f32 %v1214_v60, 0.0 }
 0x262   : > { %v2422_v1 = vpop.f32.mrf.mxu0 }
 0x263   : > { %v1330_v2 = vmax.f32 %v1206_v63, 0.0  ;;  %v1362_v38 = vpack.c.bf16 %v1332_v0, %v1331_v37  ;;  %v1227_v40 = vadd.f32 %v2422_v1, %v3352_v56 }
 0x264   : > { %v1218_v3 = vpop.f32.mrf.mxu0 }
 0x265   : > { %v1361_v4 = vpack.c.bf16 %v1330_v2, %v1329_v57  ;;  %v1219_v6 = vadd.f32 %v3352_v56, %v1218_v3  ;;  %v1335_v13 = vmax.f32 %v1227_v40, 0.0 }
 0x266   : > { %v2423_v5 = vpop.f32.mrf.mxu0 }
 0x267   : > { %v1230_v7 = vadd.f32 %v2423_v5, %v3352_v56  ;;  %2464 = vmatprep.mubr.bf16.mxu1 %v1361_v4  ;;  %v1333_v41 = vmax.f32 %v1219_v6, 0.0 }
 0x268   : > { %v1221_v8 = vpop.f32.mrf.mxu0  ;;  %2465 = vmatmul.mubr.bf16.vlgmr.msra.gmra.mxu1 %v1362_v38 }
 0x269   : > { %v1222_v9 = vadd.f32 %v3352_v56, %v1221_v8  ;;  %v1336_v10 = vmax.f32 %v1230_v7, 0.0 }
 0x26a   : > { %v2426_v11 = vpop.f32.mrf.mxu0 }
 0x26b   : > { %v1334_v12 = vmax.f32 %v1222_v9, 0.0  ;;  %v1364_v16 = vpack.c.bf16 %v1336_v10, %v1335_v13  ;;  %v1243_v44 = vadd.f32 %v2426_v11, %v3352_v56 }
 0x26c   : > { %v1234_v14 = vpop.f32.mrf.mxu0 }
 0x26d   : > { %v1363_v15 = vpack.c.bf16 %v1334_v12, %v1333_v41  ;;  %v1235_v17 = vadd.f32 %v3352_v56, %v1234_v14  ;;  %v1339_v24 = vmax.f32 %v1243_v44, 0.0 }
 0x26e   : > { %v2427_v43 = vpop.f32.mrf.mxu0 }
 0x26f   : > { %v1246_v18 = vadd.f32 %v2427_v43, %v3352_v56  ;;  %2468 = vmatprep.mubr.bf16.mxu1 %v1363_v15  ;;  %v1337_v22 = vmax.f32 %v1235_v17, 0.0 }
 0x270   : > { %v1237_v19 = vpop.f32.mrf.mxu0  ;;  %2469 = vmatmul.mubr.bf16.gmra.mxu1 %v1364_v16 }
 0x271   : > { %v1238_v20 = vadd.f32 %v3352_v56, %v1237_v19  ;;  %v1340_v21 = vmax.f32 %v1246_v18, 0.0 }
 0x272   : > { %v2430_v46 = vpop.f32.mrf.mxu0 }
 0x273   : > { %v1338_v23 = vmax.f32 %v1238_v20, 0.0  ;;  %v1366_v26 = vpack.c.bf16 %v1340_v21, %v1339_v24  ;;  %v1259_v30 = vadd.f32 %v2430_v46, %v3352_v56 }
 0x274   : > { %v1250_v25 = vpop.f32.mrf.mxu0 }
 0x275   : > { %v1365_v47 = vpack.c.bf16 %v1338_v23, %v1337_v22  ;;  %v1251_v28 = vadd.f32 %v3352_v56, %v1250_v25  ;;  %v1343_v31 = vmax.f32 %v1259_v30, 0.0 }
 0x276   : > { %v2431_v27 = vpop.f32.mrf.mxu0 }
 0x277   : > { %v1262_v29 = vadd.f32 %v2431_v27, %v3352_v56  ;;  %2472 = vmatprep.mubr.bf16.mxu1 %v1365_v47  ;;  %v1341_v39 = vmax.f32 %v1251_v28, 0.0 }
 0x278   : > { %v1253_v49 = vpop.f32.mrf.mxu0  ;;  %2473 = vmatmul.mubr.bf16.gmra.mxu1 %v1366_v26 }
 0x279   : > { %v1254_v33 = vadd.f32 %v3352_v56, %v1253_v49  ;;  %v1344_v50 = vmax.f32 %v1262_v29, 0.0 }
 0x27a   : > { %v2434_v36 = vpop.f32.mrf.mxu0 }
 0x27b   : > { %v1342_v42 = vmax.f32 %v1254_v33, 0.0  ;;  %v1368_v48 = vpack.c.bf16 %v1344_v50, %v1343_v31  ;;  %v1275_v51 = vadd.f32 %v2434_v36, %v3352_v56  ;;  %v2703_v33 = vld [vmem:[#allocation10 + $0x80] sm:$0xff]  }
 0x27c   : > { %v1266_v52 = vpop.f32.mrf.mxu0  ;;  %2510 = vmatprep.subr.bf16.mxu0 %v2703_v33 }
 0x27d   : > { %v1367_v45 = vpack.c.bf16 %v1342_v42, %v1341_v39  ;;  %v1267_v32 = vadd.f32 %v3352_v56, %v1266_v52  ;;  %v1347_v62 = vmax.f32 %v1275_v51, 0.0  ;;  %2511 = vmatpush3.bf16.msra.mxu0 %v2703_v33  ;;  %v3389_v39 = vld [vmem:[%s3584_s6 + $0x1] ss:$0 sm:$0xff] }
 0x27e   : > { %v2435_v53 = vpop.f32.mrf.mxu0 }
 0x27f   : > { %v1278_v61 = vadd.f32 %v2435_v53, %v3352_v56  ;;  %2476 = vmatprep.mubr.bf16.mxu1 %v1367_v45  ;;  %v1345_v59 = vmax.f32 %v1267_v32, 0.0 }
 0x280   : > { %v1269_v55 = vpop.f32.mrf.mxu0  ;;  %2477 = vmatmul.mubr.bf16.gmra.mxu1 %v1368_v48 }
 0x281   : > { %v1270_v54 = vadd.f32 %v3352_v56, %v1269_v55  ;;  %v1348_v34 = vmax.f32 %v1278_v61, 0.0 }
 0x282   : > { %v2438_v58 = vpop.f32.mrf.mxu0 }
 0x283   : > { %v1346_v60 = vmax.f32 %v1270_v54, 0.0  ;;  %v1370_v0 = vpack.c.bf16 %v1348_v34, %v1347_v62  ;;  %v1291_v37 = vadd.f32 %v2438_v58, %v3352_v56 }
 0x284   : > { %v1282_v35 = vpop.f32.mrf.mxu0 }
 0x285   : > { %v1369_v63 = vpack.c.bf16 %v1346_v60, %v1345_v59  ;;  %v1283_v57 = vadd.f32 %v3352_v56, %v1282_v35  ;;  %v1351_v40 = vmax.f32 %v1291_v37, 0.0 }
 0x286   : > { %v2439_v1 = vpop.f32.mrf.mxu0 }
 0x287   : > { %v1294_v2 = vadd.f32 %v2439_v1, %v3352_v56  ;;  %2480 = vmatprep.mubr.bf16.mxu1 %v1369_v63  ;;  %v1349_v6 = vmax.f32 %v1283_v57, 0.0 }
 0x288   : > { %v1285_v3 = vpop.f32.mrf.mxu0  ;;  %2481 = vmatmul.mubr.bf16.gmra.mxu1 %v1370_v0 }
 0x289   : > { %v1286_v4 = vadd.f32 %v3352_v56, %v1285_v3  ;;  %v1352_v38 = vmax.f32 %v1294_v2, 0.0 }
 0x28a   : > { %v2442_v5 = vpop.f32.mrf.mxu0 }
 0x28b   : > { %v1350_v7 = vmax.f32 %v1286_v4, 0.0  ;;  %v1372_v10 = vpack.c.bf16 %v1352_v38, %v1351_v40  ;;  %v1307_v13 = vadd.f32 %v2442_v5, %v3352_v56 }
 0x28c   : > { %v1298_v8 = vpop.f32.mrf.mxu0 }
 0x28d   : > { %v1371_v9 = vpack.c.bf16 %v1350_v7, %v1349_v6  ;;  %v1299_v41 = vadd.f32 %v3352_v56, %v1298_v8  ;;  %v1355_v44 = vmax.f32 %v1307_v13, 0.0 }
 0x28e   : > { %v2443_v11 = vpop.f32.mrf.mxu0 }
 0x28f   : > { %v1310_v12 = vadd.f32 %v2443_v11, %v3352_v56  ;;  %2484 = vmatprep.mubr.bf16.mxu1 %v1371_v9  ;;  %v1353_v17 = vmax.f32 %v1299_v41, 0.0 }
 0x290   : > { %v1301_v14 = vpop.f32.mrf.mxu0  ;;  %2485 = vmatmul.mubr.bf16.gmra.mxu1 %v1372_v10 }
 0x291   : > { %v1302_v15 = vadd.f32 %v3352_v56, %v1301_v14  ;;  %v1356_v16 = vmax.f32 %v1310_v12, 0.0 }
 0x292   : > { %v2446_v43 = vpop.f32.mrf.mxu0 }
 0x293   : > { %v1354_v18 = vmax.f32 %v1302_v15, 0.0  ;;  %v1374_v21 = vpack.c.bf16 %v1356_v16, %v1355_v44  ;;  %v1323_v24 = vadd.f32 %v2446_v43, %v3352_v56 }
 0x294   : > { %v1314_v19 = vpop.f32.mrf.mxu0 }
 0x295   : > { %v1373_v20 = vpack.c.bf16 %v1354_v18, %v1353_v17  ;;  %v1315_v22 = vadd.f32 %v3352_v56, %v1314_v19  ;;  %v1359_v29 = vmax.f32 %v1323_v24, 0.0 }
 0x296   : > { %v2447_v46 = vpop.f32.mrf.mxu0 }
 0x297   : > { %v1326_v23 = vadd.f32 %v2447_v46, %v3352_v56  ;;  %2488 = vmatprep.mubr.bf16.mxu1 %v1373_v20  ;;  %v1357_v27 = vmax.f32 %v1315_v22, 0.0 }
 0x298   : > { %v1317_v25 = vpop.f32.mrf.mxu0  ;;  %2489 = vmatmul.mubr.bf16.gmra.mxu1 %v1374_v21 }
 0x299   : > { %v1318_v47 = vadd.f32 %v3352_v56, %v1317_v25  ;;  %v1360_v26 = vmax.f32 %v1326_v23, 0.0 }
 0x29b   : > { %v1358_v28 = vmax.f32 %v1318_v47, 0.0  ;;  %v1376_v49 = vpack.c.bf16 %v1360_v26, %v1359_v29 }
 0x29d   : > { %v1375_v30 = vpack.c.bf16 %v1358_v28, %v1357_v27 }
 0x29f   : > { %2492 = vmatprep.mubr.bf16.mxu1 %v1375_v30 }
 0x2a0   : > { %2493 = vmatmul.mubr.bf16.gmra.mxu1 %v1376_v49 }
 0x328   : > { %v2466_v50 = vpop.f32.mrf.mxu1 }
 0x329   : > { %v1493_v52 = vadd.f32 %v2466_v50, %v3389_v39 }
 0x32a   : > { %v1484_v36 = vpop.f32.mrf.mxu1 }
 0x32b   : > { %v1485_v56 = vadd.f32 %v3389_v39, %v1484_v36  ;;  %v1613_v55 = vmax.f32 %v1493_v52, 0.0 }
 0x32c   : > { %v2467_v42 = vpop.f32.mrf.mxu1 }
 0x32d   : > { %v1496_v31 = vadd.f32 %v2467_v42, %v3389_v39  ;;  %v1611_v61 = vmax.f32 %v1485_v56, 0.0 }
 0x32e   : > { %v1487_v45 = vpop.f32.mrf.mxu1 }
 0x32f   : > { %v1488_v48 = vadd.f32 %v3389_v39, %v1487_v45  ;;  %v1614_v53 = vmax.f32 %v1496_v31, 0.0 }
 0x330   : > { %v2470_v32 = vpop.f32.mrf.mxu1 }
 0x331   : > { %v1612_v51 = vmax.f32 %v1488_v48, 0.0  ;;  %v1644_v58 = vpack.c.bf16 %v1614_v53, %v1613_v55  ;;  %v1509_v35 = vadd.f32 %v2470_v32, %v3389_v39 }
 0x332   : > { %v1500_v54 = vpop.f32.mrf.mxu1 }
 0x333   : > { %v1643_v34 = vpack.c.bf16 %v1612_v51, %v1611_v61  ;;  %v1501_v60 = vadd.f32 %v3389_v39, %v1500_v54  ;;  %v1617_v3 = vmax.f32 %v1509_v35, 0.0 }
 0x334   : > { %v2471_v59 = vpop.f32.mrf.mxu1 }
 0x335   : > { %v1512_v62 = vadd.f32 %v2471_v59, %v3389_v39  ;;  %2512 = vmatprep.mubr.bf16.mxu0 %v1643_v34  ;;  %v1615_v2 = vmax.f32 %v1501_v60, 0.0 }
 0x336   : > { %v1503_v63 = vpop.f32.mrf.mxu1  ;;  %2513 = vmatmul.mubr.bf16.vlgmr.msra.gmra.mxu0 %v1644_v58 }
 0x337   : > { %v1504_v0 = vadd.f32 %v3389_v39, %v1503_v63  ;;  %v1618_v1 = vmax.f32 %v1512_v62, 0.0 }
 0x338   : > { %v2474_v57 = vpop.f32.mrf.mxu1 }
 0x339   : > { %v1616_v37 = vmax.f32 %v1504_v0, 0.0  ;;  %v1646_v5 = vpack.c.bf16 %v1618_v1, %v1617_v3  ;;  %v1525_v8 = vadd.f32 %v2474_v57, %v3389_v39 }
 0x33a   : > { %v1516_v4 = vpop.f32.mrf.mxu1 }
 0x33b   : > { %v1645_v38 = vpack.c.bf16 %v1616_v37, %v1615_v2  ;;  %v1517_v7 = vadd.f32 %v3389_v39, %v1516_v4  ;;  %v1621_v14 = vmax.f32 %v1525_v8, 0.0 }
 0x33c   : > { %v2475_v6 = vpop.f32.mrf.mxu1 }
 0x33d   : > { %v1528_v40 = vadd.f32 %v2475_v6, %v3389_v39  ;;  %2516 = vmatprep.mubr.bf16.mxu0 %v1645_v38  ;;  %v1619_v12 = vmax.f32 %v1517_v7, 0.0 }
 0x33e   : > { %v1519_v9 = vpop.f32.mrf.mxu1  ;;  %2517 = vmatmul.mubr.bf16.gmra.mxu0 %v1646_v5 }
 0x33f   : > { %v1520_v10 = vadd.f32 %v3389_v39, %v1519_v9  ;;  %v1622_v11 = vmax.f32 %v1528_v40, 0.0 }
 0x340   : > { %v2478_v41 = vpop.f32.mrf.mxu1 }
 0x341   : > { %v1620_v13 = vmax.f32 %v1520_v10, 0.0  ;;  %v1648_v43 = vpack.c.bf16 %v1622_v11, %v1621_v14  ;;  %v1541_v19 = vadd.f32 %v2478_v41, %v3389_v39 }
 0x342   : > { %v1532_v15 = vpop.f32.mrf.mxu1 }
 0x343   : > { %v1647_v16 = vpack.c.bf16 %v1620_v13, %v1619_v12  ;;  %v1533_v18 = vadd.f32 %v3389_v39, %v1532_v15  ;;  %v1625_v25 = vmax.f32 %v1541_v19, 0.0 }
 0x344   : > { %v2479_v17 = vpop.f32.mrf.mxu1 }
 0x345   : > { %v1544_v44 = vadd.f32 %v2479_v17, %v3389_v39  ;;  %2520 = vmatprep.mubr.bf16.mxu0 %v1647_v16  ;;  %v1623_v23 = vmax.f32 %v1533_v18, 0.0 }
 0x346   : > { %v1535_v20 = vpop.f32.mrf.mxu1  ;;  %2521 = vmatmul.mubr.bf16.gmra.mxu0 %v1648_v43 }
 0x347   : > { %v1536_v21 = vadd.f32 %v3389_v39, %v1535_v20  ;;  %v1626_v46 = vmax.f32 %v1544_v44, 0.0 }
 0x348   : > { %v2482_v22 = vpop.f32.mrf.mxu1 }
 0x349   : > { %v1624_v24 = vmax.f32 %v1536_v21, 0.0  ;;  %v1650_v27 = vpack.c.bf16 %v1626_v46, %v1625_v25  ;;  %v1557_v49 = vadd.f32 %v2482_v22, %v3389_v39  ;;  %v3426_v21 = vld [vmem:[%s3584_s6 + $0x2] ss:$0 sm:$0xff] }
 0x34a   : > { %v1548_v47 = vpop.f32.mrf.mxu1 }
 0x34b   : > { %v1649_v26 = vpack.c.bf16 %v1624_v24, %v1623_v23  ;;  %v1549_v29 = vadd.f32 %v3389_v39, %v1548_v47  ;;  %v1629_v52 = vmax.f32 %v1557_v49, 0.0  ;;  %v2704_v23 = vld [vmem:[%s3194_s12 + $0x10] sm:$0xff] }
 0x34c   : > { %v2483_v28 = vpop.f32.mrf.mxu1 }
 0x34d   : > { %v1560_v30 = vadd.f32 %v2483_v28, %v3389_v39  ;;  %2524 = vmatprep.mubr.bf16.mxu0 %v1649_v26  ;;  %v1627_v56 = vmax.f32 %v1549_v29, 0.0  ;;  %v2705_v26 = vld [vmem:[%s3194_s12] sm:$0xff] }
 0x34e   : > { %v1551_v33 = vpop.f32.mrf.mxu1  ;;  %2525 = vmatmul.mubr.bf16.gmra.mxu0 %v1650_v27 }
 0x34f   : > { %v1552_v50 = vadd.f32 %v3389_v39, %v1551_v33  ;;  %v1630_v36 = vmax.f32 %v1560_v30, 0.0  ;;  %v2706_v30 = vld [vmem:[%s3194_s12 + $0x18] sm:$0xff] }
 0x350   : > { %v2486_v42 = vpop.f32.mrf.mxu1 }
 0x351   : > { %v1628_v31 = vmax.f32 %v1552_v50, 0.0  ;;  %v1652_v53 = vpack.c.bf16 %v1630_v36, %v1629_v52  ;;  %v1573_v55 = vadd.f32 %v2486_v42, %v3389_v39  ;;  %v2707_v36 = vld [vmem:[%s3194_s12 + $0x8] sm:$0xff]  ;;  %v2708_v52 = vld [vmem:[%s3194_s12 + $0x30] sm:$0xff] }
 0x352   : > { %v1564_v45 = vpop.f32.mrf.mxu1 }
 0x353   : > { %v1651_v48 = vpack.c.bf16 %v1628_v31, %v1627_v56  ;;  %v1565_v61 = vadd.f32 %v3389_v39, %v1564_v45  ;;  %v1633_v35 = vmax.f32 %v1573_v55, 0.0 }
 0x354   : > { %v2487_v32 = vpop.f32.mrf.mxu1 }
 0x355   : > { %v1576_v51 = vadd.f32 %v2487_v32, %v3389_v39  ;;  %2528 = vmatprep.mubr.bf16.mxu0 %v1651_v48  ;;  %v1631_v60 = vmax.f32 %v1565_v61, 0.0  ;;  %v2709_v32 = vld [vmem:[%s3194_s12 + $0x20] sm:$0xff] }
 0x356   : > { %v1567_v54 = vpop.f32.mrf.mxu1  ;;  %2529 = vmatmul.mubr.bf16.gmra.mxu0 %v1652_v53 }
 0x357   : > { %v1568_v34 = vadd.f32 %v3389_v39, %v1567_v54  ;;  %v1634_v58 = vmax.f32 %v1576_v51, 0.0  ;;  %v2710_v54 = vld [vmem:[%s3194_s12 + $0x38] sm:$0xff] }
 0x358   : > { %v2490_v59 = vpop.f32.mrf.mxu1 }
 0x359   : > { %v1632_v62 = vmax.f32 %v1568_v34, 0.0  ;;  %v1654_v1 = vpack.c.bf16 %v1634_v58, %v1633_v35  ;;  %v1589_v3 = vadd.f32 %v2490_v59, %v3389_v39 }
 0x35a   : > { %v1580_v63 = vpop.f32.mrf.mxu1 }
 0x35b   : > { %v1653_v0 = vpack.c.bf16 %v1632_v62, %v1631_v60  ;;  %v1581_v2 = vadd.f32 %v3389_v39, %v1580_v63  ;;  %v1637_v8 = vmax.f32 %v1589_v3, 0.0  ;;  %v2711_v60 = vld [vmem:[%s3194_s12 + $0x28] sm:$0xff] }
 0x35c   : > { %v2491_v57 = vpop.f32.mrf.mxu1 }
 0x35d   : > { %v1592_v37 = vadd.f32 %v2491_v57, %v3389_v39  ;;  %2532 = vmatprep.mubr.bf16.mxu0 %v1653_v0  ;;  %v1635_v7 = vmax.f32 %v1581_v2, 0.0  ;;  %v2712_v0 = vld [vmem:[%s3194_s12 + $0x50] sm:$0xff] }
 0x35e   : > { %v1583_v4 = vpop.f32.mrf.mxu1  ;;  %2533 = vmatmul.mubr.bf16.gmra.mxu0 %v1654_v1 }
 0x35f   : > { %v1584_v38 = vadd.f32 %v3389_v39, %v1583_v4  ;;  %v1638_v5 = vmax.f32 %v1592_v37, 0.0  ;;  %v2713_v37 = vld [vmem:[%s3194_s12 + $0x40] sm:$0xff] }
 0x360   : > { %v2494_v6 = vpop.f32.mrf.mxu1 }
 0x361   : > { %v1636_v40 = vmax.f32 %v1584_v38, 0.0  ;;  %v1656_v11 = vpack.c.bf16 %v1638_v5, %v1637_v8  ;;  %v1605_v14 = vadd.f32 %v2494_v6, %v3389_v39  ;;  %v2714_v5 = vld [vmem:[%s3194_s12 + $0x58] sm:$0xff]  ;;  %v2715_v8 = vld [vmem:[%s3194_s12 + $0x48] sm:$0xff] }
 0x362   : > { %v1596_v9 = vpop.f32.mrf.mxu1 }
 0x363   : > { %v1655_v10 = vpack.c.bf16 %v1636_v40, %v1635_v7  ;;  %v1597_v12 = vadd.f32 %v3389_v39, %v1596_v9  ;;  %v1641_v44 = vmax.f32 %v1605_v14, 0.0 }
 0x364   : > { %v2495_v41 = vpop.f32.mrf.mxu1 }
 0x365   : > { %v1608_v13 = vadd.f32 %v2495_v41, %v3389_v39  ;;  %2536 = vmatprep.mubr.bf16.mxu0 %v1655_v10  ;;  %v1639_v17 = vmax.f32 %v1597_v12, 0.0  ;;  %v2716_v41 = vld [vmem:[%s3194_s12 + $0x70] sm:$0xff] }
 0x366   : > { %v1599_v15 = vpop.f32.mrf.mxu1  ;;  %2537 = vmatmul.mubr.bf16.gmra.mxu0 %v1656_v11 }
 0x367   : > { %v1600_v16 = vadd.f32 %v3389_v39, %v1599_v15  ;;  %v1642_v43 = vmax.f32 %v1608_v13, 0.0  ;;  %v2717_v15 = vld [vmem:[%s3194_s12 + $0x60] sm:$0xff] }
 0x369   : > { %v1640_v18 = vmax.f32 %v1600_v16, 0.0  ;;  %v1658_v20 = vpack.c.bf16 %v1642_v43, %v1641_v44 }
 0x36b   : > { %v1657_v19 = vpack.c.bf16 %v1640_v18, %v1639_v17  ;;  %v2718_v18 = vld [vmem:[%s3194_s12 + $0x78] sm:$0xff] }
 0x36d   : > { %2540 = vmatprep.mubr.bf16.mxu0 %v1657_v19 }
 0x36e   : > { %2541 = vmatmul.mubr.bf16.gmra.mxu0 %v1658_v20 }
 0x3f6   : > { %v2514_v46 = vpop.f32.mrf.mxu0 }
 0x3f7   : > { %v1775_v22 = vadd.f32 %v2514_v46, %v3426_v21  ;;  %v2719_v46 = vld [vmem:[%s3194_s12 + $0x68] sm:$0xff] }
 0x3f8   : > { %v1766_v39 = vpop.f32.mrf.mxu0 }
 0x3f9   : > { %v1895_v24 = vadd.f32 %v2704_v23, %v1775_v22  ;;  %v1767_v25 = vadd.f32 %v3426_v21, %v1766_v39 }
 0x3fa   : > { %v2515_v47 = vpop.f32.mrf.mxu0 }
 0x3fb   : > { %1927 = vst [vmem:[%s3433_s11 + $0x10] sm:$0xff] %v1895_v24  ;;  %v1893_v27 = vadd.f32 %v2705_v26, %v1767_v25  ;;  %v1778_v28 = vadd.f32 %v2515_v47, %v3426_v21  ;;  %v2720_v24 = vld [vmem:[%s3194_s12 + $0x90] sm:$0xff] }
 0x3fc   : > { %v1769_v29 = vpop.f32.mrf.mxu0 }
 0x3fd   : > { %1925 = vst [vmem:[%s3433_s11] sm:$0xff] %v1893_v27  ;;  %v1896_v49 = vadd.f32 %v2706_v30, %v1778_v28  ;;  %v1770_v33 = vadd.f32 %v3426_v21, %v1769_v29  ;;  %v2721_v27 = vld [vmem:[%s3194_s12 + $0x80] sm:$0xff] }
 0x3fe   : > { %v2518_v50 = vpop.f32.mrf.mxu0 }
 0x3ff   : > { %1928 = vst [vmem:[%s3433_s11 + $0x18] sm:$0xff] %v1896_v49  ;;  %v1894_v42 = vadd.f32 %v2707_v36, %v1770_v33  ;;  %v1791_v56 = vadd.f32 %v2518_v50, %v3426_v21  ;;  %v2722_v49 = vld [vmem:[%s3194_s12 + $0x98] sm:$0xff] }
 0x400   : > { %v1782_v31 = vpop.f32.mrf.mxu0 }
 0x401   : > { %1926 = vst [vmem:[%s3433_s11 + $0x8] sm:$0xff] %v1894_v42  ;;  %v1899_v45 = vadd.f32 %v2708_v52, %v1791_v56  ;;  %v1783_v48 = vadd.f32 %v3426_v21, %v1782_v31  ;;  %v2723_v42 = vld [vmem:[%s3194_s12 + $0x88] sm:$0xff] }
 0x402   : > { %v2519_v53 = vpop.f32.mrf.mxu0 }
 0x403   : > { %1931 = vst [vmem:[%s3433_s11 + $0x30] sm:$0xff] %v1899_v45  ;;  %v1897_v61 = vadd.f32 %v2709_v32, %v1783_v48  ;;  %v1794_v51 = vadd.f32 %v2519_v53, %v3426_v21  ;;  %v2724_v45 = vld [vmem:[%s3194_s12 + $0xb0] sm:$0xff] }
 0x404   : > { %v1785_v55 = vpop.f32.mrf.mxu0 }
 0x405   : > { %1929 = vst [vmem:[%s3433_s11 + $0x20] sm:$0xff] %v1897_v61  ;;  %v1900_v34 = vadd.f32 %v2710_v54, %v1794_v51  ;;  %v1786_v58 = vadd.f32 %v3426_v21, %v1785_v55  ;;  %v2725_v61 = vld [vmem:[%s3194_s12 + $0xa0] sm:$0xff] }
 0x406   : > { %v2522_v59 = vpop.f32.mrf.mxu0 }
 0x407   : > { %1932 = vst [vmem:[%s3433_s11 + $0x38] sm:$0xff] %v1900_v34  ;;  %v1898_v62 = vadd.f32 %v2711_v60, %v1786_v58  ;;  %v1807_v35 = vadd.f32 %v2522_v59, %v3426_v21  ;;  %v2726_v34 = vld [vmem:[%s3194_s12 + $0xb8] sm:$0xff] }
 0x408   : > { %v1798_v63 = vpop.f32.mrf.mxu0 }
 0x409   : > { %1930 = vst [vmem:[%s3433_s11 + $0x28] sm:$0xff] %v1898_v62  ;;  %v1903_v1 = vadd.f32 %v2712_v0, %v1807_v35  ;;  %v1799_v57 = vadd.f32 %v3426_v21, %v1798_v63  ;;  %v2727_v62 = vld [vmem:[%s3194_s12 + $0xa8] sm:$0xff] }
 0x40a   : > { %v2523_v2 = vpop.f32.mrf.mxu0 }
 0x40b   : > { %1935 = vst [vmem:[%s3433_s11 + $0x50] sm:$0xff] %v1903_v1  ;;  %v1901_v3 = vadd.f32 %v2713_v37, %v1799_v57  ;;  %v1810_v4 = vadd.f32 %v2523_v2, %v3426_v21  ;;  %v2728_v1 = vld [vmem:[%s3194_s12 + $0xd0] sm:$0xff] }
 0x40c   : > { %v1801_v38 = vpop.f32.mrf.mxu0 }
 0x40d   : > { %1933 = vst [vmem:[%s3433_s11 + $0x40] sm:$0xff] %v1901_v3  ;;  %v1904_v6 = vadd.f32 %v2714_v5, %v1810_v4  ;;  %v1802_v7 = vadd.f32 %v3426_v21, %v1801_v38  ;;  %v2729_v3 = vld [vmem:[%s3194_s12 + $0xc0] sm:$0xff] }
 0x40e   : > { %v2526_v40 = vpop.f32.mrf.mxu0 }
 0x40f   : > { %1936 = vst [vmem:[%s3433_s11 + $0x58] sm:$0xff] %v1904_v6  ;;  %v1902_v9 = vadd.f32 %v2715_v8, %v1802_v7  ;;  %v1823_v10 = vadd.f32 %v2526_v40, %v3426_v21  ;;  %v2730_v6 = vld [vmem:[%s3194_s12 + $0xd8] sm:$0xff] }
 0x410   : > { %v1814_v11 = vpop.f32.mrf.mxu0 }
 0x411   : > { %1934 = vst [vmem:[%s3433_s11 + $0x48] sm:$0xff] %v1902_v9  ;;  %v1907_v12 = vadd.f32 %v2716_v41, %v1823_v10  ;;  %v1815_v13 = vadd.f32 %v3426_v21, %v1814_v11  ;;  %v2731_v9 = vld [vmem:[%s3194_s12 + $0xc8] sm:$0xff] }
 0x412   : > { %v2527_v14 = vpop.f32.mrf.mxu0 }
 0x413   : > { %1939 = vst [vmem:[%s3433_s11 + $0x70] sm:$0xff] %v1907_v12  ;;  %v1905_v16 = vadd.f32 %v2717_v15, %v1815_v13  ;;  %v1826_v43 = vadd.f32 %v2527_v14, %v3426_v21  ;;  %v2732_v12 = vld [vmem:[%s3194_s12 + $0xf0] sm:$0xff] }
 0x414   : > { %v1817_v17 = vpop.f32.mrf.mxu0 }
 0x415   : > { %1937 = vst [vmem:[%s3433_s11 + $0x60] sm:$0xff] %v1905_v16  ;;  %v1908_v44 = vadd.f32 %v2718_v18, %v1826_v43  ;;  %v1818_v19 = vadd.f32 %v3426_v21, %v1817_v17  ;;  %v2733_v16 = vld [vmem:[%s3194_s12 + $0xe0] sm:$0xff] }
 0x416   : > { %v2530_v20 = vpop.f32.mrf.mxu0 }
 0x417   : > { %1940 = vst [vmem:[%s3433_s11 + $0x78] sm:$0xff] %v1908_v44  ;;  %v1906_v22 = vadd.f32 %v2719_v46, %v1818_v19  ;;  %v1839_v39 = vadd.f32 %v2530_v20, %v3426_v21  ;;  %v2734_v44 = vld [vmem:[%s3194_s12 + $0xf8] sm:$0xff]  ;;  %v2735_v46 = vld [vmem:[%s3194_s12 + $0xe8] sm:$0xff] }
 0x418   : > { %v1830_v23 = vpop.f32.mrf.mxu0 }
 0x419   : > { %1938 = vst [vmem:[%s3433_s11 + $0x68] sm:$0xff] %v1906_v22  ;;  %v1911_v25 = vadd.f32 %v2720_v24, %v1839_v39  ;;  %v1831_v47 = vadd.f32 %v3426_v21, %v1830_v23 }
 0x41a   : > { %v2531_v26 = vpop.f32.mrf.mxu0 }
 0x41b   : > { %1943 = vst [vmem:[%s3433_s11 + $0x90] sm:$0xff] %v1911_v25  ;;  %v1909_v28 = vadd.f32 %v2721_v27, %v1831_v47  ;;  %v1842_v29 = vadd.f32 %v2531_v26, %v3426_v21 }
 0x41c   : > { %v1833_v30 = vpop.f32.mrf.mxu0 }
 0x41d   : > { %1941 = vst [vmem:[%s3433_s11 + $0x80] sm:$0xff] %v1909_v28  ;;  %v1912_v33 = vadd.f32 %v2722_v49, %v1842_v29  ;;  %v1834_v50 = vadd.f32 %v3426_v21, %v1833_v30 }
 0x41e   : > { %v2534_v36 = vpop.f32.mrf.mxu0 }
 0x41f   : > { %1944 = vst [vmem:[%s3433_s11 + $0x98] sm:$0xff] %v1912_v33  ;;  %v1910_v56 = vadd.f32 %v2723_v42, %v1834_v50  ;;  %v1855_v31 = vadd.f32 %v2534_v36, %v3426_v21 }
 0x420   : > { %v1846_v52 = vpop.f32.mrf.mxu0 }
 0x421   : > { %1942 = vst [vmem:[%s3433_s11 + $0x88] sm:$0xff] %v1910_v56  ;;  %v1915_v48 = vadd.f32 %v2724_v45, %v1855_v31  ;;  %v1847_v53 = vadd.f32 %v3426_v21, %v1846_v52 }
 0x422   : > { %v2535_v32 = vpop.f32.mrf.mxu0 }
 0x423   : > { %1947 = vst [vmem:[%s3433_s11 + $0xb0] sm:$0xff] %v1915_v48  ;;  %v1913_v51 = vadd.f32 %v2725_v61, %v1847_v53  ;;  %v1858_v55 = vadd.f32 %v2535_v32, %v3426_v21 }
 0x424   : > { %v1849_v54 = vpop.f32.mrf.mxu0 }
 0x425   : > { %1945 = vst [vmem:[%s3433_s11 + $0xa0] sm:$0xff] %v1913_v51  ;;  %v1916_v58 = vadd.f32 %v2726_v34, %v1858_v55  ;;  %v1850_v59 = vadd.f32 %v3426_v21, %v1849_v54 }
 0x426   : > { %v2538_v60 = vpop.f32.mrf.mxu0 }
 0x427   : > { %1948 = vst [vmem:[%s3433_s11 + $0xb8] sm:$0xff] %v1916_v58  ;;  %v1914_v35 = vadd.f32 %v2727_v62, %v1850_v59  ;;  %v1871_v63 = vadd.f32 %v2538_v60, %v3426_v21 }
 0x428   : > { %v1862_v0 = vpop.f32.mrf.mxu0 }
 0x429   : > { %1946 = vst [vmem:[%s3433_s11 + $0xa8] sm:$0xff] %v1914_v35  ;;  %v1919_v57 = vadd.f32 %v2728_v1, %v1871_v63  ;;  %v1863_v2 = vadd.f32 %v3426_v21, %v1862_v0 }
 0x42a   : > { %v2539_v37 = vpop.f32.mrf.mxu0 }
 0x42b   : > { %1951 = vst [vmem:[%s3433_s11 + $0xd0] sm:$0xff] %v1919_v57  ;;  %v1917_v4 = vadd.f32 %v2729_v3, %v1863_v2  ;;  %v1874_v38 = vadd.f32 %v2539_v37, %v3426_v21 }
 0x42c   : > { %v1865_v5 = vpop.f32.mrf.mxu0 }
 0x42d   : > { %1949 = vst [vmem:[%s3433_s11 + $0xc0] sm:$0xff] %v1917_v4  ;;  %v1920_v7 = vadd.f32 %v2730_v6, %v1874_v38  ;;  %v1866_v40 = vadd.f32 %v3426_v21, %v1865_v5 }
 0x42e   : > { %v2542_v8 = vpop.f32.mrf.mxu0 }
 0x42f   : > { %1952 = vst [vmem:[%s3433_s11 + $0xd8] sm:$0xff] %v1920_v7  ;;  %v1918_v10 = vadd.f32 %v2731_v9, %v1866_v40  ;;  %v1887_v11 = vadd.f32 %v2542_v8, %v3426_v21 }
 0x430   : > { %v1878_v41 = vpop.f32.mrf.mxu0 }
 0x431   : > { %1950 = vst [vmem:[%s3433_s11 + $0xc8] sm:$0xff] %v1918_v10  ;;  %v1923_v13 = vadd.f32 %v2732_v12, %v1887_v11  ;;  %v1879_v14 = vadd.f32 %v3426_v21, %v1878_v41 }
 0x432   : > { %v2543_v15 = vpop.f32.mrf.mxu0 }
 0x433   : > { %1955 = vst [vmem:[%s3433_s11 + $0xf0] sm:$0xff] %v1923_v13  ;;  %v1921_v43 = vadd.f32 %v2733_v16, %v1879_v14  ;;  %v1890_v17 = vadd.f32 %v2543_v15, %v3426_v21 }
 0x434   : > { %v1881_v18 = vpop.f32.mrf.mxu0 }
 0x435   : > { %1953 = vst [vmem:[%s3433_s11 + $0xe0] sm:$0xff] %v1921_v43  ;;  %v1924_v19 = vadd.f32 %v2734_v44, %v1890_v17  ;;  %v1882_v20 = vadd.f32 %v3426_v21, %v1881_v18 }
 0x437   : > { %1956 = vst [vmem:[%s3433_s11 + $0xf8] sm:$0xff] %v1924_v19  ;;  %v1922_v22 = vadd.f32 %v2735_v46, %v1882_v20 }
 0x439   : > { %1954 = vst [vmem:[%s3433_s11 + $0xe8] sm:$0xff] %v1922_v22 }
 0x43a   : > { %2883 = shalt.err (!%p2880_p6)
}
 0x43b   : > { %s2884_s12 = scalar_lea.hbm %s3530_s3, 4096  ;;  %s2888_s18 = scalar_lea.hbm %s3585_s7, 8192 }
 0x43c   : > { %p2885_p7 = scmp.ne.s32.totalorder %s3530_s3, %s2884_s12  ;;  %p2889_p2 = scmp.lt.s32.totalorder %s3530_s3, %s3585_s7 }
 0x43d   : > { %p2890_p3 = scmp.lt.s32.totalorder %s2888_s18, %s2884_s12 }
 0x43e   : > { %p2886_p5 = pnand %p2885_p7, %p3614_p13 }
 0x43f   : > { %p2891_p12 = por %p2890_p3, %p2889_p2 }
 0x440   : > { %p2887_p8 = pneg %p2886_p5 }
 0x442   : > { %p2892_p9 = pnand %p2891_p12, %p2887_p8 }
 0x444   : > { %2895 = shalt.err (!%p2892_p9)
}
 0x445   : > { %s2958_s23 = smov 128   ;;  %s2959_s29 = smov 8  }
 0x446   : > { %2576 = dma.vmem_to_hbm [thread:$0]  (%p3614_p13), %s3532_s16, 4096, %s3530_s3, %s1958_s28, %s2958_s23, %s2958_s23, %s2959_s29  }
 0x447 PF: > { %s1986_s11 = sand.u32 1, %s2934_s24   ;;  %p3615_p0 = scmp.ne.s32.totalorder %s3596_s8, 0 }
 0x448   : > { %p3616_p11 = scmp.ge.s32.totalorder %s2946_s27, 2  ;;  %s1987_s17 = scalar_lea.sflag [#allocation4], %s1986_s11 }
 0x44a   : > { %p2596_p10 = pnand %p3616_p11, %p3615_p0 }
 0x44c   : > { %p2597_p1 = pneg %p2596_p10 }
 0x44e   : > { %2929 = dma.done.wait (%p2597_p1), %s1987_s17, 4096  }
 0x44f   : > { %2931 = vsyncadd (%p2597_p1), %s1987_s17, 4294963200  ;;  %s3617_s19 = sld [smem:[#allocation17_spill]]  ;;  %p24_p4 = scmp.ge.s32.totalorder %s3089_s14, 4  }
 0x450   : > { %s3618_s24 = smov %s2938_s25  ;;  %s3619_s25 = smov %s2942_s26 }
 0x451   : > { %s3621_s27 = smov %s3089_s14  ;;  %26 = sbr.rel (!%p24_p4) target bundleno = 13 (0xd), region = 122 }
 0x455   : > { %s3620_s26 = smov %s3617_s19 }
 0x456   :  { %1992 = vsyncpa [#allocation3], 1 }
 0x457   :  { %1994 = vsyncpa [#allocation3 + $0x1], 1 }
 0x458   :  { %1995 = vsyncpa [#allocation6], 1 }
 0x459   :  { %1997 = vsyncpa [#allocation6 + $0x1], 1 }
 0x45a   :  { %1998 = vsyncpa [#allocation9], 1 }
 0x45b   :  { %1999 = vsyncpa [#allocation4], 1 }
 0x45c   :  { %2001 = vsyncpa [#allocation4 + $0x1], 1 }

</bundles_post_ra>
